<compile_context>
chip_gen: v5e
topology: v5e:2x2
jax: 0.10.0
libtpu: 0.0.40
codegen_flags: <defaults>
</compile_context>

<pallas_src>
import functools

import jax
import jax.numpy as jnp
from jax.experimental import pallas as pl
from jax.experimental.pallas import tpu as pltpu

SUBLANE = 8     # f32 sublane multiple (batch padding)
LANE = 128      # lane width (hidden padding)


def _round_up(x, m):
    return (x + m - 1) // m * m


def _ceil_div(a, b):
    return -(-a // b)


def _vmem_limit(estimate_bytes):
    # Explicit scoped-VMEM budget (review: v7x only has 64 MiB physical VMEM
    # per TensorCore; v5e/v6e default scoped limits are 16/32 MiB).
    return int(min(max(2 * estimate_bytes, 32 * 1024 * 1024), 64 * 1024 * 1024))


def _single_tensorcore():
    """True for single-TensorCore chips (v5e/v6e): interleave both encoder
    recurrences in one kernel.  Multi-core chips (v4/v5p/v7x) instead shard
    the encoder grid axis ("parallel") across cores."""
    try:
        kind = jax.devices()[0].device_kind.lower()
    except Exception:
        return False
    return ("lite" in kind) or ("v5e" in kind) or ("v6e" in kind)


# ----------------------------------------------------------------------------
# Phase 1: dense input projections, row-tiled.
#   x_ref    : (1, tile_m, E)        bf16 time-major rows
#   w_ih_ref : (1, E, 3*H_pad)       bf16, gates r|z|n fused along lanes
#   b_ref    : (1, 1, 3*H_pad)       f32, b_ih (+ b_hh for r,z) folded
#   gi_ref   : (1, tile_m, 3*H_pad)  bf16 output
# Row tiles beyond this encoder's valid time range skip the matmul and are
# zero-filled (their input index_map is clamped, so no extra DMA either).
# ----------------------------------------------------------------------------
def _input_proj_kernel(x_ref, w_ih_ref, b_ref, gi_ref, *, nrt_q, nrt_d):
    e = pl.program_id(0)
    m = pl.program_id(1)
    valid = m < jnp.where(e == 0, nrt_q, nrt_d)

    @pl.when(valid)
    def _():
        acc = jnp.dot(x_ref[0], w_ih_ref[0],
                      preferred_element_type=jnp.float32)
        gi_ref[0] = (acc + b_ref[0]).astype(gi_ref.dtype)

    @pl.when(jnp.logical_not(valid))
    def _():
        gi_ref[...] = jnp.zeros_like(gi_ref)


# ----------------------------------------------------------------------------
# Phase 2: GRU recurrence, `time_block` steps per grid iteration, with
# `enc_per_block` encoders (1 or 2) interleaved inside the unrolled loop.
#   gi_ref   : (enc, time_block, B_pad, 3*H_pad) bf16
#   len_ref  : (enc, B_pad, 1) int32
#   w_hh_ref : (enc, H_pad, 3*H_pad) bf16
#   b_hn_ref : (enc, 1, H_pad) f32          (n-gate hidden bias)
#   h_ref    : (enc, B_pad, H_pad) f32      revisited output block
# ----------------------------------------------------------------------------
def _gru_recurrence_kernel(gi_ref, len_ref, w_hh_ref, b_hn_ref, h_ref, *,
                           time_block, h_pad, enc_per_block,
                           nq_chunks, nd_chunks):
    c = pl.program_id(1)

    @pl.when(c == 0)
    def _():
        h_ref[...] = jnp.zeros_like(h_ref)

    if enc_per_block == 2:
        limit = max(nq_chunks, nd_chunks)          # static
    else:
        limit = jnp.where(pl.program_id(0) == 0, nq_chunks, nd_chunks)

    @pl.when(c < limit)
    def _():
        t_base = c * time_block
        # Per-encoder constants, hoisted out of the time loop (already bf16 /
        # f32 in HBM, so no per-chunk VPU casts).
        gi_views = [gi_ref.at[e] for e in range(enc_per_block)]
        w_hh = [w_hh_ref[e] for e in range(enc_per_block)]
        b_hn = [b_hn_ref[e] for e in range(enc_per_block)]
        seq_len = [len_ref[e] for e in range(enc_per_block)]

        def step(i, hs):
            new_hs = []
            for e in range(enc_per_block):   # static; interleaves the chains
                h = hs[e]                                    # (B_pad, H_pad) f32
                gi_t = gi_views[e][i].astype(jnp.float32)    # (B_pad, 3*H_pad)
                gh = jnp.dot(h.astype(jnp.bfloat16), w_hh[e],
                             preferred_element_type=jnp.float32)
                r = jax.nn.sigmoid(gi_t[:, :h_pad] + gh[:, :h_pad])
                z = jax.nn.sigmoid(gi_t[:, h_pad:2 * h_pad]
                                   + gh[:, h_pad:2 * h_pad])
                n = jnp.tanh(gi_t[:, 2 * h_pad:]
                             + r * (gh[:, 2 * h_pad:] + b_hn[e]))
                h_new = (1.0 - z) * n + z * h
                # pack_padded_sequence semantics: freeze finished rows.
                new_hs.append(jnp.where(t_base + i < seq_len[e], h_new, h))
            return tuple(new_hs)

        hs = jax.lax.fori_loop(
            0, time_block, step,
            tuple(h_ref[e] for e in range(enc_per_block)), unroll=True)
        for e in range(enc_per_block):
            h_ref[e] = hs[e]


# ----------------------------------------------------------------------------
# Weight repacking: (3, E, H)/(3, H, H)/(3, 1, H) torch-style per-gate params
# -> fused, lane-padded, bf16 layout used by the kernels.
# ----------------------------------------------------------------------------
def _pack_params(params, h_pad):
    w_ih, w_hh, b_ih, b_hh = params
    H = w_ih.shape[-1]

    def pad_lane(a):
        return jnp.pad(a, [(0, 0)] * (a.ndim - 1) + [(0, h_pad - H)])

    # W_ih: (E, 3*H_pad), gates r|z|n concatenated along lanes.
    w_ih_f = jnp.concatenate([pad_lane(w_ih[g]) for g in range(3)], axis=1)
    # W_hh: pad rows H -> H_pad too (padded h lanes are always 0).
    w_hh_rows = jnp.pad(w_hh, ((0, 0), (0, h_pad - H), (0, 0)))
    w_hh_f = jnp.concatenate([pad_lane(w_hh_rows[g]) for g in range(3)], axis=1)
    # Folded gi bias: b_ih for all gates + b_hh for r,z.  b_hh_n stays
    # separate because n = tanh(gi_n + r * (gh_n + b_hh_n)).
    gi_b = jnp.concatenate([pad_lane(b_ih[0] + b_hh[0]),
                            pad_lane(b_ih[1] + b_hh[1]),
                            pad_lane(b_ih[2])], axis=1)        # (1, 3*H_pad)
    b_hh_n = pad_lane(b_hh[2])                                  # (1, H_pad)
    return (w_ih_f.astype(jnp.bfloat16), w_hh_f.astype(jnp.bfloat16),
            gi_b.astype(jnp.float32), b_hh_n.astype(jnp.float32))


# ----------------------------------------------------------------------------
# ParallelEncoders forward.
# ----------------------------------------------------------------------------
def parallel_encoders_forward(query_emb, doc_emb, q_params, d_params,
                              query_lengths=None, doc_lengths=None,
                              time_block=8, phase1_target_rows=1024,
                              interleave_encoders=None):
    B, T_q, E = query_emb.shape
    Bd, T_d, Ed = doc_emb.shape
    assert B == Bd and E == Ed
    H = q_params[1].shape[-1]

    if interleave_encoders is None:
        interleave_encoders = _single_tensorcore()
    enc_per_block = 2 if interleave_encoders else 1
    num_groups = 2 // enc_per_block

    h_pad = _round_up(H, LANE)
    b_pad = _round_up(B, SUBLANE)
    nq_chunks = _ceil_div(T_q, time_block)       # static per-encoder valid
    nd_chunks = _ceil_div(T_d, time_block)       # chunk counts
    num_chunks = max(nq_chunks, nd_chunks)
    t_pad = num_chunks * time_block
    rows = t_pad * b_pad

    # ---- pad + stack inputs (time-major rows, pre-cast to bf16) ------------
    def prep_x(x, T):
        x = jnp.pad(x, ((0, b_pad - B), (0, t_pad - T), (0, 0)))
        return jnp.transpose(x, (1, 0, 2)).astype(jnp.bfloat16)

    x_flat = jnp.stack([prep_x(query_emb, T_q),
                        prep_x(doc_emb, T_d)]).reshape(2, rows, E)

    def prep_len(lengths, T):
        if lengths is None:
            lengths = jnp.full((B,), T, dtype=jnp.int32)
        lengths = lengths.astype(jnp.int32)
        return jnp.pad(lengths, (0, b_pad - B)).reshape(b_pad, 1)

    len_all = jnp.stack([prep_len(query_lengths, T_q),
                         prep_len(doc_lengths, T_d)])    # (2, b_pad, 1) int32

    qp = _pack_params(q_params, h_pad)
    dp = _pack_params(d_params, h_pad)
    w_ih = jnp.stack([qp[0], dp[0]])                     # (2, E, 3*h_pad) bf16
    w_hh = jnp.stack([qp[1], dp[1]])                     # (2, h_pad, 3*h_pad) bf16
    gi_b = jnp.stack([qp[2], dp[2]])                     # (2, 1, 3*h_pad) f32
    b_hn = jnp.stack([qp[3], dp[3]])                     # (2, 1, h_pad) f32

    # ---- phase-1 row tiling, aligned to recurrence chunks -------------------
    chunk_rows = time_block * b_pad
    cpt = max(1, min(num_chunks, phase1_target_rows // chunk_rows))
    while num_chunks % cpt:
        cpt -= 1
    tile_m = cpt * chunk_rows
    n_row_tiles = num_chunks // cpt
    nrt_q = _ceil_div(nq_chunks, cpt)            # valid row tiles per encoder
    nrt_d = _ceil_div(nd_chunks, cpt)

    def x_map(e, m):
        # Clamp past-the-end tiles onto the last valid tile so the pipeline
        # skips the (useless) input DMA; the kernel zero-fills those outputs.
        lim = jnp.where(e == 0, nrt_q, nrt_d)
        return (e, jnp.minimum(m, lim - 1), 0)

    p1_est = (2 * tile_m * (E + 3 * h_pad) * 2      # double-buffered x + gi (bf16)
              + 2 * E * 3 * h_pad * 2)              # W_ih

    gi_flat = pl.pallas_call(
        functools.partial(_input_proj_kernel, nrt_q=nrt_q, nrt_d=nrt_d),
        out_shape=jax.ShapeDtypeStruct((2, rows, 3 * h_pad), jnp.bfloat16),
        grid_spec=pltpu.PrefetchScalarGridSpec(
            num_scalar_prefetch=0,
            grid=(2, n_row_tiles),
            in_specs=[
                pl.BlockSpec((1, tile_m, E), x_map),
                pl.BlockSpec((1, E, 3 * h_pad), lambda e, m: (e, 0, 0)),
                pl.BlockSpec((1, 1, 3 * h_pad), lambda e, m: (e, 0, 0)),
            ],
            out_specs=pl.BlockSpec((1, tile_m, 3 * h_pad),
                                   lambda e, m: (e, m, 0)),
        ),
        compiler_params=pltpu.CompilerParams(
            dimension_semantics=("parallel", "parallel"),
            vmem_limit_bytes=_vmem_limit(p1_est)),
    )(x_flat, w_ih, gi_b)
    gi = gi_flat.reshape(2, t_pad, b_pad, 3 * h_pad)

    # ---- phase 2: chunked GRU recurrence ------------------------------------
    def gi_map(g, c):
        if enc_per_block == 2:
            return (g, c, 0, 0)
        # Clamp past-the-end chunks (skipped by the kernel) to avoid DMA.
        lim = jnp.where(g == 0, nq_chunks, nd_chunks)
        return (g, jnp.minimum(c, lim - 1), 0, 0)

    p2_est = (2 * enc_per_block * time_block * b_pad * 3 * h_pad * 2   # gi chunk x2
              + 2 * enc_per_block * h_pad * 3 * h_pad * 2              # W_hh x2
              + 2 * enc_per_block * b_pad * h_pad * 4                  # h out
              + (1 << 20))

    h_final = pl.pallas_call(
        functools.partial(_gru_recurrence_kernel, time_block=time_block,
                          h_pad=h_pad, enc_per_block=enc_per_block,
                          nq_chunks=nq_chunks, nd_chunks=nd_chunks),
        out_shape=jax.ShapeDtypeStruct((2, b_pad, h_pad), jnp.float32),
        grid_spec=pltpu.PrefetchScalarGridSpec(
            num_scalar_prefetch=0,
            grid=(num_groups, num_chunks),
            in_specs=[
                pl.BlockSpec((enc_per_block, time_block, b_pad, 3 * h_pad),
                             gi_map),
                pl.BlockSpec((enc_per_block, b_pad, 1), lambda g, c: (g, 0, 0)),
                pl.BlockSpec((enc_per_block, h_pad, 3 * h_pad),
                             lambda g, c: (g, 0, 0)),
                pl.BlockSpec((enc_per_block, 1, h_pad), lambda g, c: (g, 0, 0)),
            ],
            out_specs=pl.BlockSpec((enc_per_block, b_pad, h_pad),
                                   lambda g, c: (g, 0, 0)),
        ),
        compiler_params=pltpu.CompilerParams(
            dimension_semantics=("parallel", "arbitrary"),
            vmem_limit_bytes=_vmem_limit(p2_est)),
    )(gi, len_all, w_hh, b_hn)

    query_vec = h_final[0, :B, :H].astype(query_emb.dtype)
    doc_vec = h_final[1, :B, :H].astype(doc_emb.dtype)
    return query_vec, doc_vec


# ----------------------------------------------------------------------------
# Deterministic parameter init (PyTorch-style U(-1/sqrt(H), 1/sqrt(H))),
# stored torch-style per gate (r, z, n).
# ----------------------------------------------------------------------------
def init_gru_params(key, embedding_dim, hidden_dim):
    bound = 1.0 / jnp.sqrt(jnp.float32(hidden_dim))
    k1, k2, k3, k4 = jax.random.split(key, 4)
    w_ih = jax.random.uniform(k1, (3, embedding_dim, hidden_dim),
                              jnp.float32, -bound, bound)
    w_hh = jax.random.uniform(k2, (3, hidden_dim, hidden_dim),
                              jnp.float32, -bound, bound)
    b_ih = jax.random.uniform(k3, (3, 1, hidden_dim), jnp.float32, -bound, bound)
    b_hh = jax.random.uniform(k4, (3, 1, hidden_dim), jnp.float32, -bound, bound)
    return w_ih, w_hh, b_ih, b_hh


# ----------------------------------------------------------------------------
# Pure-JAX reference GRU (lax.scan).  Mirrors the kernel's numeric convention
# (bf16 MXU operands, f32 accumulation, bf16-stored input projections) so the
# tolerance can stay tight.  NOTE: a true fp32 PyTorch GRU would differ by
# bf16 rounding accumulated over the sequence.
# ----------------------------------------------------------------------------
def gru_encoder_ref(x, params, lengths=None):
    w_ih, w_hh, b_ih, b_hh = params
    B, T, E = x.shape
    H = w_hh.shape[-1]
    if lengths is None:
        lengths = jnp.full((B,), T, dtype=jnp.int32)

    def mm(a, b):
        return jnp.dot(a.astype(jnp.bfloat16), b.astype(jnp.bfloat16),
                       preferred_element_type=jnp.float32)

    def bf16_round(a):
        return a.astype(jnp.bfloat16).astype(jnp.float32)

    def step(h, inputs):
        x_t, t = inputs
        gi_r = bf16_round(mm(x_t, w_ih[0]) + b_ih[0] + b_hh[0])
        gi_z = bf16_round(mm(x_t, w_ih[1]) + b_ih[1] + b_hh[1])
        gi_n = bf16_round(mm(x_t, w_ih[2]) + b_ih[2])
        gh_r = mm(h, w_hh[0])
        gh_z = mm(h, w_hh[1])
        gh_n = mm(h, w_hh[2])
        r = jax.nn.sigmoid(gi_r + gh_r)
        z = jax.nn.sigmoid(gi_z + gh_z)
        n = jnp.tanh(gi_n + r * (gh_n + b_hh[2]))
        h_new = (1.0 - z) * n + z * h
        valid = (t < lengths)[:, None]
        return jnp.where(valid, h_new, h), None

    h0 = jnp.zeros((B, H), jnp.float32)
    xs = (jnp.transpose(x, (1, 0, 2)), jnp.arange(T, dtype=jnp.int32))
    h_last, _ = jax.lax.scan(step, h0, xs)
    return h_last


# ----------------------------------------------------------------------------
if __name__ == "__main__":
    B, E, H = 2, 32, 32
    T_Q, T_D = 8, 12

    key = jax.random.PRNGKey(0)
    k_qx, k_dx, k_qp, k_dp = jax.random.split(key, 4)

    query_emb = jax.random.normal(k_qx, (B, T_Q, E), jnp.float32)
    doc_emb = jax.random.normal(k_dx, (B, T_D, E), jnp.float32)
    query_lengths = jnp.array([T_Q, 5], dtype=jnp.int32)
    doc_lengths = jnp.array([T_D, 7], dtype=jnp.int32)

    q_params = init_gru_params(k_qp, E, H)
    d_params = init_gru_params(k_dp, E, H)

    fwd = jax.jit(parallel_encoders_forward)
    query_vec, doc_vec = fwd(query_emb, doc_emb, q_params, d_params,
                             query_lengths, doc_lengths)
    jax.block_until_ready((query_vec, doc_vec))

    # Correctness check against the pure-JAX GRU reference.
    q_ref = gru_encoder_ref(query_emb, q_params, query_lengths)
    d_ref = gru_encoder_ref(doc_emb, d_params, doc_lengths)
    assert query_vec.shape == (B, H) and doc_vec.shape == (B, H)
    assert float(jnp.max(jnp.abs(query_vec - q_ref))) < 1e-2
    assert float(jnp.max(jnp.abs(doc_vec - d_ref))) < 1e-2

    print("KERNEL_OK")
</pallas_src>

<mosaic_0001>
module attributes {stable_mosaic.version = 11 : i64} {
  func.func @_input_proj_kernel(%arg0: i32, %arg1: i32, %arg2: memref<1x128x32xbf16, #tpu.memory_space<vmem>>, %arg3: memref<1x32x384xbf16, #tpu.memory_space<vmem>>, %arg4: memref<1x1x384xf32, #tpu.memory_space<vmem>>, %arg5: memref<1x128x384xbf16, #tpu.memory_space<vmem>>) attributes {dimension_semantics = [#tpu.dimension_semantics<parallel>, #tpu.dimension_semantics<parallel>], iteration_bounds = array<i64: 2, 1>, scalar_prefetch = 0 : i64, scratch_operands = 0 : i64, tpu.core_type = #tpu.core_type<tc>, window_params = [{transform_indices = @transform_0, window_bounds = array<i64: 1, 128, 32>}, {transform_indices = @transform_1, window_bounds = array<i64: 1, 32, 384>}, {transform_indices = @transform_2, window_bounds = array<i64: 1, 1, 384>}, {transform_indices = @transform_3, window_bounds = array<i64: 1, 128, 384>}]} {
    %c0_i32 = arith.constant 0 : i32
    %0 = arith.cmpi eq, %arg0, %c0_i32 : i32
    %c1_i32 = arith.constant 1 : i32
    %c1_i32_0 = arith.constant 1 : i32
    %1 = arith.select %0, %c1_i32, %c1_i32_0 : i32
    %2 = arith.cmpi slt, %arg1, %1 : i32
    %3 = arith.extui %2 : i1 to i32
    %c0_i32_1 = arith.constant 0 : i32
    %4 = arith.cmpi ne, %3, %c0_i32_1 : i32
    scf.if %4 {
      %c0 = arith.constant 0 : index
      %c0_3 = arith.constant 0 : index
      %c0_4 = arith.constant 0 : index
      %8 = vector.load %arg2[%c0, %c0_3, %c0_4] : memref<1x128x32xbf16, #tpu.memory_space<vmem>>, vector<1x128x32xbf16>
      %9 = vector.shape_cast %8 : vector<1x128x32xbf16> to vector<128x32xbf16>
      %c0_5 = arith.constant 0 : index
      %c0_6 = arith.constant 0 : index
      %c0_7 = arith.constant 0 : index
      %10 = vector.load %arg3[%c0_5, %c0_6, %c0_7] : memref<1x32x384xbf16, #tpu.memory_space<vmem>>, vector<1x32x384xbf16>
      %11 = vector.shape_cast %10 : vector<1x32x384xbf16> to vector<32x384xbf16>
      %cst = arith.constant dense<0.000000e+00> : vector<128x384xf32>
      %12 = tpu.matmul %9, %11, %cst {dimension_numbers = #tpu.dot_dimension_numbers<[1], [0], [0], [1], [0, 0, 1, 1], [], []>} : vector<128x32xbf16>, vector<32x384xbf16>, vector<128x384xf32> -> vector<128x384xf32>
      %c0_8 = arith.constant 0 : index
      %c0_9 = arith.constant 0 : index
      %c0_10 = arith.constant 0 : index
      %13 = vector.load %arg4[%c0_8, %c0_9, %c0_10] : memref<1x1x384xf32, #tpu.memory_space<vmem>>, vector<1x1x384xf32>
      %14 = vector.shape_cast %13 : vector<1x1x384xf32> to vector<1x384xf32>
      %15 = vector.broadcast %14 : vector<1x384xf32> to vector<128x384xf32>
      %16 = arith.addf %12, %15 : vector<128x384xf32>
      %17 = arith.truncf %16 : vector<128x384xf32> to vector<128x384xbf16>
      %c0_11 = arith.constant 0 : index
      %c0_12 = arith.constant 0 : index
      %c0_13 = arith.constant 0 : index
      %18 = vector.load %arg5[%c0_11, %c0_12, %c0_13] : memref<1x128x384xbf16, #tpu.memory_space<vmem>>, vector<1x128x384xbf16>
      %19 = vector.shape_cast %18 : vector<1x128x384xbf16> to vector<128x384xbf16>
      %20 = vector.shape_cast %17 : vector<128x384xbf16> to vector<1x128x384xbf16>
      tpu.vector_store %arg5[%c0_11, %c0_12, %c0_13], %20 {strides = array<i32>} : memref<1x128x384xbf16, #tpu.memory_space<vmem>>, vector<1x128x384xbf16>,
    } else {
    }
    %true = arith.constant true
    %5 = arith.xori %2, %true : i1
    %6 = arith.extui %5 : i1 to i32
    %c0_i32_2 = arith.constant 0 : i32
    %7 = arith.cmpi ne, %6, %c0_i32_2 : i32
    scf.if %7 {
      %cst = arith.constant 0.000000e+00 : bf16
      %8 = vector.broadcast %cst : bf16 to vector<1x128x384xbf16>
      %c0 = arith.constant 0 : index
      %c0_3 = arith.constant 0 : index
      %c0_4 = arith.constant 0 : index
      %9 = vector.load %arg5[%c0, %c0_3, %c0_4] : memref<1x128x384xbf16, #tpu.memory_space<vmem>>, vector<1x128x384xbf16>
      tpu.vector_store %arg5[%c0, %c0_3, %c0_4], %8 {strides = array<i32>} : memref<1x128x384xbf16, #tpu.memory_space<vmem>>, vector<1x128x384xbf16>,
    } else {
    }
    return
  }
  func.func @transform_0(%arg0: i32, %arg1: i32) -> (i32, i32, i32) {
    %c0_i32 = arith.constant 0 : i32
    %0 = arith.cmpi eq, %arg0, %c0_i32 : i32
    %c1_i32 = arith.constant 1 : i32
    %c1_i32_0 = arith.constant 1 : i32
    %1 = arith.select %0, %c1_i32, %c1_i32_0 : i32
    %c1_i32_1 = arith.constant 1 : i32
    %2 = arith.subi %1, %c1_i32_1 : i32
    %3 = arith.minsi %arg1, %2 : i32
    %c0_i32_2 = arith.constant 0 : i32
    %c0_i32_3 = arith.constant 0 : i32
    return %arg0, %3, %c0_i32_2 : i32, i32, i32
  }
  func.func @transform_1(%arg0: i32, %arg1: i32) -> (i32, i32, i32) {
    %c0_i32 = arith.constant 0 : i32
    %c0_i32_0 = arith.constant 0 : i32
    %c0_i32_1 = arith.constant 0 : i32
    return %arg0, %c0_i32, %c0_i32_0 : i32, i32, i32
  }
  func.func @transform_2(%arg0: i32, %arg1: i32) -> (i32, i32, i32) {
    %c0_i32 = arith.constant 0 : i32
    %c0_i32_0 = arith.constant 0 : i32
    %c0_i32_1 = arith.constant 0 : i32
    return %arg0, %c0_i32, %c0_i32_0 : i32, i32, i32
  }
  func.func @transform_3(%arg0: i32, %arg1: i32) -> (i32, i32, i32) {
    %c0_i32 = arith.constant 0 : i32
    %c0_i32_0 = arith.constant 0 : i32
    return %arg0, %arg1, %c0_i32 : i32, i32, i32
  }
}

module attributes {stable_mosaic.version = 11 : i64} {
  func.func @_gru_recurrence_kernel(%arg0: i32, %arg1: i32, %arg2: memref<1x8x8x384xbf16, #tpu.memory_space<vmem>>, %arg3: memref<1x8x1xi32, #tpu.memory_space<vmem>>, %arg4: memref<1x128x384xbf16, #tpu.memory_space<vmem>>, %arg5: memref<1x1x128xf32, #tpu.memory_space<vmem>>, %arg6: memref<1x8x128xf32, #tpu.memory_space<vmem>>) attributes {dimension_semantics = [#tpu.dimension_semantics<parallel>, #tpu.dimension_semantics<arbitrary>], iteration_bounds = array<i64: 2, 2>, scalar_prefetch = 0 : i64, scratch_operands = 0 : i64, tpu.core_type = #tpu.core_type<tc>, window_params = [{transform_indices = @transform_0, window_bounds = array<i64: 1, 8, 8, 384>}, {transform_indices = @transform_1, window_bounds = array<i64: 1, 8, 1>}, {transform_indices = @transform_2, window_bounds = array<i64: 1, 128, 384>}, {transform_indices = @transform_3, window_bounds = array<i64: 1, 1, 128>}, {transform_indices = @transform_4, window_bounds = array<i64: 1, 8, 128>}]} {
    %c0_i32 = arith.constant 0 : i32
    %0 = arith.cmpi eq, %arg1, %c0_i32 : i32
    %1 = arith.extui %0 : i1 to i32
    %c0_i32_0 = arith.constant 0 : i32
    %2 = arith.cmpi ne, %1, %c0_i32_0 : i32
    scf.if %2 {
      %cst = arith.constant 0.000000e+00 : f32
      %8 = vector.broadcast %cst : f32 to vector<1x8x128xf32>
      %c0 = arith.constant 0 : index
      %c0_3 = arith.constant 0 : index
      %c0_4 = arith.constant 0 : index
      %9 = vector.load %arg6[%c0, %c0_3, %c0_4] : memref<1x8x128xf32, #tpu.memory_space<vmem>>, vector<1x8x128xf32>
      tpu.vector_store %arg6[%c0, %c0_3, %c0_4], %8 {strides = array<i32>} : memref<1x8x128xf32, #tpu.memory_space<vmem>>, vector<1x8x128xf32>,
    } else {
    }
    %c0_i32_1 = arith.constant 0 : i32
    %3 = arith.cmpi eq, %arg0, %c0_i32_1 : i32
    %c1_i32 = arith.constant 1 : i32
    %c2_i32 = arith.constant 2 : i32
    %4 = arith.select %3, %c1_i32, %c2_i32 : i32
    %5 = arith.cmpi slt, %arg1, %4 : i32
    %6 = arith.extui %5 : i1 to i32
    %c0_i32_2 = arith.constant 0 : i32
    %7 = arith.cmpi ne, %6, %c0_i32_2 : i32
    scf.if %7 {
      %c8_i32 = arith.constant 8 : i32
      %8 = arith.muli %arg1, %c8_i32 : i32
      %c0 = arith.constant 0 : index
      %c0_3 = arith.constant 0 : index
      %c0_4 = arith.constant 0 : index
      %9 = vector.load %arg4[%c0, %c0_3, %c0_4] : memref<1x128x384xbf16, #tpu.memory_space<vmem>>, vector<1x128x384xbf16>
      %10 = vector.shape_cast %9 : vector<1x128x384xbf16> to vector<128x384xbf16>
      %c0_5 = arith.constant 0 : index
      %c0_6 = arith.constant 0 : index
      %c0_7 = arith.constant 0 : index
      %11 = vector.load %arg5[%c0_5, %c0_6, %c0_7] : memref<1x1x128xf32, #tpu.memory_space<vmem>>, vector<1x1x128xf32>
      %12 = vector.shape_cast %11 : vector<1x1x128xf32> to vector<1x128xf32>
      %c0_8 = arith.constant 0 : index
      %c0_9 = arith.constant 0 : index
      %c0_10 = arith.constant 0 : index
      %13 = vector.load %arg3[%c0_8, %c0_9, %c0_10] : memref<1x8x1xi32, #tpu.memory_space<vmem>>, vector<1x8x1xi32>
      %14 = vector.shape_cast %13 : vector<1x8x1xi32> to vector<8x1xi32>
      %c0_11 = arith.constant 0 : index
      %c0_12 = arith.constant 0 : index
      %c0_13 = arith.constant 0 : index
      %15 = vector.load %arg6[%c0_11, %c0_12, %c0_13] : memref<1x8x128xf32, #tpu.memory_space<vmem>>, vector<1x8x128xf32>
      %16 = vector.shape_cast %15 : vector<1x8x128xf32> to vector<8x128xf32>
      %c0_i32_14 = arith.constant 0 : i32
      %c0_i32_15 = arith.constant 0 : i32
      %c0_i32_16 = arith.constant 0 : i32
      %c0_i32_17 = arith.constant 0 : i32
      %c0_i32_18 = arith.constant 0 : i32
      %17 = tpu.memref_slice %arg2[%c0_i32_14, %c0_i32_16, %c0_i32_17, %c0_i32_18] : memref<1x8x8x384xbf16, #tpu.memory_space<vmem>> -> memref<1x8x8x384xbf16, #tpu.memory_space<vmem>>
      %18 = tpu.memref_squeeze %17 : memref<1x8x8x384xbf16, #tpu.memory_space<vmem>> -> memref<8x8x384xbf16, #tpu.memory_space<vmem>>
      %19 = arith.index_cast %c0_i32_15 : i32 to index
      %c0_19 = arith.constant 0 : index
      %c0_20 = arith.constant 0 : index
      %20 = vector.load %18[%19, %c0_19, %c0_20] : memref<8x8x384xbf16, #tpu.memory_space<vmem>>, vector<1x8x384xbf16>
      %21 = vector.shape_cast %20 : vector<1x8x384xbf16> to vector<8x384xbf16>
      %22 = arith.extf %21 : vector<8x384xbf16> to vector<8x384xf32>
      %23 = arith.truncf %16 : vector<8x128xf32> to vector<8x128xbf16>
      %cst = arith.constant dense<0.000000e+00> : vector<8x384xf32>
      %24 = tpu.matmul %23, %10, %cst {dimension_numbers = #tpu.dot_dimension_numbers<[1], [0], [0], [1], [0, 0, 1, 1], [], []>} : vector<8x128xbf16>, vector<128x384xbf16>, vector<8x384xf32> -> vector<8x384xf32>
      %25 = vector.extract_strided_slice %22 {offsets = [0, 0], sizes = [8, 128], strides = [1, 1]} : vector<8x384xf32> to vector<8x128xf32>
      %26 = vector.extract_strided_slice %24 {offsets = [0, 0], sizes = [8, 128], strides = [1, 1]} : vector<8x384xf32> to vector<8x128xf32>
      %27 = arith.addf %25, %26 : vector<8x128xf32>
      %28 = arith.negf %27 : vector<8x128xf32>
      %29 = math.exp %28 : vector<8x128xf32>
      %cst_21 = arith.constant 1.000000e+00 : f32
      %30 = vector.broadcast %cst_21 : f32 to vector<8x128xf32>
      %31 = arith.addf %30, %29 : vector<8x128xf32>
      %32 = arith.divf %30, %31 : vector<8x128xf32>
      %33 = vector.extract_strided_slice %22 {offsets = [0, 128], sizes = [8, 128], strides = [1, 1]} : vector<8x384xf32> to vector<8x128xf32>
      %34 = vector.extract_strided_slice %24 {offsets = [0, 128], sizes = [8, 128], strides = [1, 1]} : vector<8x384xf32> to vector<8x128xf32>
      %35 = arith.addf %33, %34 : vector<8x128xf32>
      %36 = arith.negf %35 : vector<8x128xf32>
      %37 = math.exp %36 : vector<8x128xf32>
      %cst_22 = arith.constant 1.000000e+00 : f32
      %38 = vector.broadcast %cst_22 : f32 to vector<8x128xf32>
      %39 = arith.addf %38, %37 : vector<8x128xf32>
      %40 = arith.divf %38, %39 : vector<8x128xf32>
      %41 = vector.extract_strided_slice %22 {offsets = [0, 256], sizes = [8, 128], strides = [1, 1]} : vector<8x384xf32> to vector<8x128xf32>
      %42 = vector.extract_strided_slice %24 {offsets = [0, 256], sizes = [8, 128], strides = [1, 1]} : vector<8x384xf32> to vector<8x128xf32>
      %43 = vector.broadcast %12 : vector<1x128xf32> to vector<8x128xf32>
      %44 = arith.addf %42, %43 : vector<8x128xf32>
      %45 = arith.mulf %32, %44 : vector<8x128xf32>
      %46 = arith.addf %41, %45 : vector<8x128xf32>
      %47 = math.tanh %46 : vector<8x128xf32>
      %cst_23 = arith.constant 1.000000e+00 : f32
      %48 = vector.broadcast %cst_23 : f32 to vector<8x128xf32>
      %49 = arith.subf %48, %40 : vector<8x128xf32>
      %50 = arith.mulf %49, %47 : vector<8x128xf32>
      %51 = arith.mulf %40, %16 : vector<8x128xf32>
      %52 = arith.addf %50, %51 : vector<8x128xf32>
      %53 = arith.addi %8, %c0_i32_15 : i32
      %54 = vector.broadcast %53 : i32 to vector<8x1xi32>
      %55 = arith.cmpi slt, %54, %14 : vector<8x1xi32>
      %56 = vector.shape_cast %55 : vector<8x1xi1> to vector<8x1xi1>
      %57 = vector.broadcast %56 : vector<8x1xi1> to vector<8x128xi1>
      %58 = arith.select %57, %52, %16 : vector<8x128xi1>, vector<8x128xf32>
      %c1_i32_24 = arith.constant 1 : i32
      %c0_i32_25 = arith.constant 0 : i32
      %c0_i32_26 = arith.constant 0 : i32
      %c0_i32_27 = arith.constant 0 : i32
      %59 = tpu.memref_slice %arg2[%c0_i32_14, %c0_i32_25, %c0_i32_26, %c0_i32_27] : memref<1x8x8x384xbf16, #tpu.memory_space<vmem>> -> memref<1x8x8x384xbf16, #tpu.memory_space<vmem>>
      %60 = tpu.memref_squeeze %59 : memref<1x8x8x384xbf16, #tpu.memory_space<vmem>> -> memref<8x8x384xbf16, #tpu.memory_space<vmem>>
      %61 = arith.index_cast %c1_i32_24 : i32 to index
      %c0_28 = arith.constant 0 : index
      %c0_29 = arith.constant 0 : index
      %62 = vector.load %60[%61, %c0_28, %c0_29] : memref<8x8x384xbf16, #tpu.memory_space<vmem>>, vector<1x8x384xbf16>
      %63 = vector.shape_cast %62 : vector<1x8x384xbf16> to vector<8x384xbf16>
      %64 = arith.extf %63 : vector<8x384xbf16> to vector<8x384xf32>
      %65 = arith.truncf %58 : vector<8x128xf32> to vector<8x128xbf16>
      %cst_30 = arith.constant dense<0.000000e+00> : vector<8x384xf32>
      %66 = tpu.matmul %65, %10, %cst_30 {dimension_numbers = #tpu.dot_dimension_numbers<[1], [0], [0], [1], [0, 0, 1, 1], [], []>} : vector<8x128xbf16>, vector<128x384xbf16>, vector<8x384xf32> -> vector<8x384xf32>
      %67 = vector.extract_strided_slice %64 {offsets = [0, 0], sizes = [8, 128], strides = [1, 1]} : vector<8x384xf32> to vector<8x128xf32>
      %68 = vector.extract_strided_slice %66 {offsets = [0, 0], sizes = [8, 128], strides = [1, 1]} : vector<8x384xf32> to vector<8x128xf32>
      %69 = arith.addf %67, %68 : vector<8x128xf32>
      %70 = arith.negf %69 : vector<8x128xf32>
      %71 = math.exp %70 : vector<8x128xf32>
      %cst_31 = arith.constant 1.000000e+00 : f32
      %72 = vector.broadcast %cst_31 : f32 to vector<8x128xf32>
      %73 = arith.addf %72, %71 : vector<8x128xf32>
      %74 = arith.divf %72, %73 : vector<8x128xf32>
      %75 = vector.extract_strided_slice %64 {offsets = [0, 128], sizes = [8, 128], strides = [1, 1]} : vector<8x384xf32> to vector<8x128xf32>
      %76 = vector.extract_strided_slice %66 {offsets = [0, 128], sizes = [8, 128], strides = [1, 1]} : vector<8x384xf32> to vector<8x128xf32>
      %77 = arith.addf %75, %76 : vector<8x128xf32>
      %78 = arith.negf %77 : vector<8x128xf32>
      %79 = math.exp %78 : vector<8x128xf32>
      %cst_32 = arith.constant 1.000000e+00 : f32
      %80 = vector.broadcast %cst_32 : f32 to vector<8x128xf32>
      %81 = arith.addf %80, %79 : vector<8x128xf32>
      %82 = arith.divf %80, %81 : vector<8x128xf32>
      %83 = vector.extract_strided_slice %64 {offsets = [0, 256], sizes = [8, 128], strides = [1, 1]} : vector<8x384xf32> to vector<8x128xf32>
      %84 = vector.extract_strided_slice %66 {offsets = [0, 256], sizes = [8, 128], strides = [1, 1]} : vector<8x384xf32> to vector<8x128xf32>
      %85 = vector.broadcast %12 : vector<1x128xf32> to vector<8x128xf32>
      %86 = arith.addf %84, %85 : vector<8x128xf32>
      %87 = arith.mulf %74, %86 : vector<8x128xf32>
      %88 = arith.addf %83, %87 : vector<8x128xf32>
      %89 = math.tanh %88 : vector<8x128xf32>
      %cst_33 = arith.constant 1.000000e+00 : f32
      %90 = vector.broadcast %cst_33 : f32 to vector<8x128xf32>
      %91 = arith.subf %90, %82 : vector<8x128xf32>
      %92 = arith.mulf %91, %89 : vector<8x128xf32>
      %93 = arith.mulf %82, %58 : vector<8x128xf32>
      %94 = arith.addf %92, %93 : vector<8x128xf32>
      %95 = arith.addi %8, %c1_i32_24 : i32
      %96 = vector.broadcast %95 : i32 to vector<8x1xi32>
      %97 = arith.cmpi slt, %96, %14 : vector<8x1xi32>
      %98 = vector.shape_cast %97 : vector<8x1xi1> to vector<8x1xi1>
      %99 = vector.broadcast %98 : vector<8x1xi1> to vector<8x128xi1>
      %100 = arith.select %99, %94, %58 : vector<8x128xi1>, vector<8x128xf32>
      %c2_i32_34 = arith.constant 2 : i32
      %c0_i32_35 = arith.constant 0 : i32
      %c0_i32_36 = arith.constant 0 : i32
      %c0_i32_37 = arith.constant 0 : i32
      %101 = tpu.memref_slice %arg2[%c0_i32_14, %c0_i32_35, %c0_i32_36, %c0_i32_37] : memref<1x8x8x384xbf16, #tpu.memory_space<vmem>> -> memref<1x8x8x384xbf16, #tpu.memory_space<vmem>>
      %102 = tpu.memref_squeeze %101 : memref<1x8x8x384xbf16, #tpu.memory_space<vmem>> -> memref<8x8x384xbf16, #tpu.memory_space<vmem>>
      %103 = arith.index_cast %c2_i32_34 : i32 to index
      %c0_38 = arith.constant 0 : index
      %c0_39 = arith.constant 0 : index
      %104 = vector.load %102[%103, %c0_38, %c0_39] : memref<8x8x384xbf16, #tpu.memory_space<vmem>>, vector<1x8x384xbf16>
      %105 = vector.shape_cast %104 : vector<1x8x384xbf16> to vector<8x384xbf16>
      %106 = arith.extf %105 : vector<8x384xbf16> to vector<8x384xf32>
      %107 = arith.truncf %100 : vector<8x128xf32> to vector<8x128xbf16>
      %cst_40 = arith.constant dense<0.000000e+00> : vector<8x384xf32>
      %108 = tpu.matmul %107, %10, %cst_40 {dimension_numbers = #tpu.dot_dimension_numbers<[1], [0], [0], [1], [0, 0, 1, 1], [], []>} : vector<8x128xbf16>, vector<128x384xbf16>, vector<8x384xf32> -> vector<8x384xf32>
      %109 = vector.extract_strided_slice %106 {offsets = [0, 0], sizes = [8, 128], strides = [1, 1]} : vector<8x384xf32> to vector<8x128xf32>
      %110 = vector.extract_strided_slice %108 {offsets = [0, 0], sizes = [8, 128], strides = [1, 1]} : vector<8x384xf32> to vector<8x128xf32>
      %111 = arith.addf %109, %110 : vector<8x128xf32>
      %112 = arith.negf %111 : vector<8x128xf32>
      %113 = math.exp %112 : vector<8x128xf32>
      %cst_41 = arith.constant 1.000000e+00 : f32
      %114 = vector.broadcast %cst_41 : f32 to vector<8x128xf32>
      %115 = arith.addf %114, %113 : vector<8x128xf32>
      %116 = arith.divf %114, %115 : vector<8x128xf32>
      %117 = vector.extract_strided_slice %106 {offsets = [0, 128], sizes = [8, 128], strides = [1, 1]} : vector<8x384xf32> to vector<8x128xf32>
      %118 = vector.extract_strided_slice %108 {offsets = [0, 128], sizes = [8, 128], strides = [1, 1]} : vector<8x384xf32> to vector<8x128xf32>
      %119 = arith.addf %117, %118 : vector<8x128xf32>
      %120 = arith.negf %119 : vector<8x128xf32>
      %121 = math.exp %120 : vector<8x128xf32>
      %cst_42 = arith.constant 1.000000e+00 : f32
      %122 = vector.broadcast %cst_42 : f32 to vector<8x128xf32>
      %123 = arith.addf %122, %121 : vector<8x128xf32>
      %124 = arith.divf %122, %123 : vector<8x128xf32>
      %125 = vector.extract_strided_slice %106 {offsets = [0, 256], sizes = [8, 128], strides = [1, 1]} : vector<8x384xf32> to vector<8x128xf32>
      %126 = vector.extract_strided_slice %108 {offsets = [0, 256], sizes = [8, 128], strides = [1, 1]} : vector<8x384xf32> to vector<8x128xf32>
      %127 = vector.broadcast %12 : vector<1x128xf32> to vector<8x128xf32>
      %128 = arith.addf %126, %127 : vector<8x128xf32>
      %129 = arith.mulf %116, %128 : vector<8x128xf32>
      %130 = arith.addf %125, %129 : vector<8x128xf32>
      %131 = math.tanh %130 : vector<8x128xf32>
      %cst_43 = arith.constant 1.000000e+00 : f32
      %132 = vector.broadcast %cst_43 : f32 to vector<8x128xf32>
      %133 = arith.subf %132, %124 : vector<8x128xf32>
      %134 = arith.mulf %133, %131 : vector<8x128xf32>
      %135 = arith.mulf %124, %100 : vector<8x128xf32>
      %136 = arith.addf %134, %135 : vector<8x128xf32>
      %137 = arith.addi %8, %c2_i32_34 : i32
      %138 = vector.broadcast %137 : i32 to vector<8x1xi32>
      %139 = arith.cmpi slt, %138, %14 : vector<8x1xi32>
      %140 = vector.shape_cast %139 : vector<8x1xi1> to vector<8x1xi1>
      %141 = vector.broadcast %140 : vector<8x1xi1> to vector<8x128xi1>
      %142 = arith.select %141, %136, %100 : vector<8x128xi1>, vector<8x128xf32>
      %c3_i32 = arith.constant 3 : i32
      %c0_i32_44 = arith.constant 0 : i32
      %c0_i32_45 = arith.constant 0 : i32
      %c0_i32_46 = arith.constant 0 : i32
      %143 = tpu.memref_slice %arg2[%c0_i32_14, %c0_i32_44, %c0_i32_45, %c0_i32_46] : memref<1x8x8x384xbf16, #tpu.memory_space<vmem>> -> memref<1x8x8x384xbf16, #tpu.memory_space<vmem>>
      %144 = tpu.memref_squeeze %143 : memref<1x8x8x384xbf16, #tpu.memory_space<vmem>> -> memref<8x8x384xbf16, #tpu.memory_space<vmem>>
      %145 = arith.index_cast %c3_i32 : i32 to index
      %c0_47 = arith.constant 0 : index
      %c0_48 = arith.constant 0 : index
      %146 = vector.load %144[%145, %c0_47, %c0_48] : memref<8x8x384xbf16, #tpu.memory_space<vmem>>, vector<1x8x384xbf16>
      %147 = vector.shape_cast %146 : vector<1x8x384xbf16> to vector<8x384xbf16>
      %148 = arith.extf %147 : vector<8x384xbf16> to vector<8x384xf32>
      %149 = arith.truncf %142 : vector<8x128xf32> to vector<8x128xbf16>
      %cst_49 = arith.constant dense<0.000000e+00> : vector<8x384xf32>
      %150 = tpu.matmul %149, %10, %cst_49 {dimension_numbers = #tpu.dot_dimension_numbers<[1], [0], [0], [1], [0, 0, 1, 1], [], []>} : vector<8x128xbf16>, vector<128x384xbf16>, vector<8x384xf32> -> vector<8x384xf32>
      %151 = vector.extract_strided_slice %148 {offsets = [0, 0], sizes = [8, 128], strides = [1, 1]} : vector<8x384xf32> to vector<8x128xf32>
      %152 = vector.extract_strided_slice %150 {offsets = [0, 0], sizes = [8, 128], strides = [1, 1]} : vector<8x384xf32> to vector<8x128xf32>
      %153 = arith.addf %151, %152 : vector<8x128xf32>
      %154 = arith.negf %153 : vector<8x128xf32>
      %155 = math.exp %154 : vector<8x128xf32>
      %cst_50 = arith.constant 1.000000e+00 : f32
      %156 = vector.broadcast %cst_50 : f32 to vector<8x128xf32>
      %157 = arith.addf %156, %155 : vector<8x128xf32>
      %158 = arith.divf %156, %157 : vector<8x128xf32>
      %159 = vector.extract_strided_slice %148 {offsets = [0, 128], sizes = [8, 128], strides = [1, 1]} : vector<8x384xf32> to vector<8x128xf32>
      %160 = vector.extract_strided_slice %150 {offsets = [0, 128], sizes = [8, 128], strides = [1, 1]} : vector<8x384xf32> to vector<8x128xf32>
      %161 = arith.addf %159, %160 : vector<8x128xf32>
      %162 = arith.negf %161 : vector<8x128xf32>
      %163 = math.exp %162 : vector<8x128xf32>
      %cst_51 = arith.constant 1.000000e+00 : f32
      %164 = vector.broadcast %cst_51 : f32 to vector<8x128xf32>
      %165 = arith.addf %164, %163 : vector<8x128xf32>
      %166 = arith.divf %164, %165 : vector<8x128xf32>
      %167 = vector.extract_strided_slice %148 {offsets = [0, 256], sizes = [8, 128], strides = [1, 1]} : vector<8x384xf32> to vector<8x128xf32>
      %168 = vector.extract_strided_slice %150 {offsets = [0, 256], sizes = [8, 128], strides = [1, 1]} : vector<8x384xf32> to vector<8x128xf32>
      %169 = vector.broadcast %12 : vector<1x128xf32> to vector<8x128xf32>
      %170 = arith.addf %168, %169 : vector<8x128xf32>
      %171 = arith.mulf %158, %170 : vector<8x128xf32>
      %172 = arith.addf %167, %171 : vector<8x128xf32>
      %173 = math.tanh %172 : vector<8x128xf32>
      %cst_52 = arith.constant 1.000000e+00 : f32
      %174 = vector.broadcast %cst_52 : f32 to vector<8x128xf32>
      %175 = arith.subf %174, %166 : vector<8x128xf32>
      %176 = arith.mulf %175, %173 : vector<8x128xf32>
      %177 = arith.mulf %166, %142 : vector<8x128xf32>
      %178 = arith.addf %176, %177 : vector<8x128xf32>
      %179 = arith.addi %8, %c3_i32 : i32
      %180 = vector.broadcast %179 : i32 to vector<8x1xi32>
      %181 = arith.cmpi slt, %180, %14 : vector<8x1xi32>
      %182 = vector.shape_cast %181 : vector<8x1xi1> to vector<8x1xi1>
      %183 = vector.broadcast %182 : vector<8x1xi1> to vector<8x128xi1>
      %184 = arith.select %183, %178, %142 : vector<8x128xi1>, vector<8x128xf32>
      %c4_i32 = arith.constant 4 : i32
      %c0_i32_53 = arith.constant 0 : i32
      %c0_i32_54 = arith.constant 0 : i32
      %c0_i32_55 = arith.constant 0 : i32
      %185 = tpu.memref_slice %arg2[%c0_i32_14, %c0_i32_53, %c0_i32_54, %c0_i32_55] : memref<1x8x8x384xbf16, #tpu.memory_space<vmem>> -> memref<1x8x8x384xbf16, #tpu.memory_space<vmem>>
      %186 = tpu.memref_squeeze %185 : memref<1x8x8x384xbf16, #tpu.memory_space<vmem>> -> memref<8x8x384xbf16, #tpu.memory_space<vmem>>
      %187 = arith.index_cast %c4_i32 : i32 to index
      %c0_56 = arith.constant 0 : index
      %c0_57 = arith.constant 0 : index
      %188 = vector.load %186[%187, %c0_56, %c0_57] : memref<8x8x384xbf16, #tpu.memory_space<vmem>>, vector<1x8x384xbf16>
      %189 = vector.shape_cast %188 : vector<1x8x384xbf16> to vector<8x384xbf16>
      %190 = arith.extf %189 : vector<8x384xbf16> to vector<8x384xf32>
      %191 = arith.truncf %184 : vector<8x128xf32> to vector<8x128xbf16>
      %cst_58 = arith.constant dense<0.000000e+00> : vector<8x384xf32>
      %192 = tpu.matmul %191, %10, %cst_58 {dimension_numbers = #tpu.dot_dimension_numbers<[1], [0], [0], [1], [0, 0, 1, 1], [], []>} : vector<8x128xbf16>, vector<128x384xbf16>, vector<8x384xf32> -> vector<8x384xf32>
      %193 = vector.extract_strided_slice %190 {offsets = [0, 0], sizes = [8, 128], strides = [1, 1]} : vector<8x384xf32> to vector<8x128xf32>
      %194 = vector.extract_strided_slice %192 {offsets = [0, 0], sizes = [8, 128], strides = [1, 1]} : vector<8x384xf32> to vector<8x128xf32>
      %195 = arith.addf %193, %194 : vector<8x128xf32>
      %196 = arith.negf %195 : vector<8x128xf32>
      %197 = math.exp %196 : vector<8x128xf32>
      %cst_59 = arith.constant 1.000000e+00 : f32
      %198 = vector.broadcast %cst_59 : f32 to vector<8x128xf32>
      %199 = arith.addf %198, %197 : vector<8x128xf32>
      %200 = arith.divf %198, %199 : vector<8x128xf32>
      %201 = vector.extract_strided_slice %190 {offsets = [0, 128], sizes = [8, 128], strides = [1, 1]} : vector<8x384xf32> to vector<8x128xf32>
      %202 = vector.extract_strided_slice %192 {offsets = [0, 128], sizes = [8, 128], strides = [1, 1]} : vector<8x384xf32> to vector<8x128xf32>
      %203 = arith.addf %201, %202 : vector<8x128xf32>
      %204 = arith.negf %203 : vector<8x128xf32>
      %205 = math.exp %204 : vector<8x128xf32>
      %cst_60 = arith.constant 1.000000e+00 : f32
      %206 = vector.broadcast %cst_60 : f32 to vector<8x128xf32>
      %207 = arith.addf %206, %205 : vector<8x128xf32>
      %208 = arith.divf %206, %207 : vector<8x128xf32>
      %209 = vector.extract_strided_slice %190 {offsets = [0, 256], sizes = [8, 128], strides = [1, 1]} : vector<8x384xf32> to vector<8x128xf32>
      %210 = vector.extract_strided_slice %192 {offsets = [0, 256], sizes = [8, 128], strides = [1, 1]} : vector<8x384xf32> to vector<8x128xf32>
      %211 = vector.broadcast %12 : vector<1x128xf32> to vector<8x128xf32>
      %212 = arith.addf %210, %211 : vector<8x128xf32>
      %213 = arith.mulf %200, %212 : vector<8x128xf32>
      %214 = arith.addf %209, %213 : vector<8x128xf32>
      %215 = math.tanh %214 : vector<8x128xf32>
      %cst_61 = arith.constant 1.000000e+00 : f32
      %216 = vector.broadcast %cst_61 : f32 to vector<8x128xf32>
      %217 = arith.subf %216, %208 : vector<8x128xf32>
      %218 = arith.mulf %217, %215 : vector<8x128xf32>
      %219 = arith.mulf %208, %184 : vector<8x128xf32>
      %220 = arith.addf %218, %219 : vector<8x128xf32>
      %221 = arith.addi %8, %c4_i32 : i32
      %222 = vector.broadcast %221 : i32 to vector<8x1xi32>
      %223 = arith.cmpi slt, %222, %14 : vector<8x1xi32>
      %224 = vector.shape_cast %223 : vector<8x1xi1> to vector<8x1xi1>
      %225 = vector.broadcast %224 : vector<8x1xi1> to vector<8x128xi1>
      %226 = arith.select %225, %220, %184 : vector<8x128xi1>, vector<8x128xf32>
      %c5_i32 = arith.constant 5 : i32
      %c0_i32_62 = arith.constant 0 : i32
      %c0_i32_63 = arith.constant 0 : i32
      %c0_i32_64 = arith.constant 0 : i32
      %227 = tpu.memref_slice %arg2[%c0_i32_14, %c0_i32_62, %c0_i32_63, %c0_i32_64] : memref<1x8x8x384xbf16, #tpu.memory_space<vmem>> -> memref<1x8x8x384xbf16, #tpu.memory_space<vmem>>
      %228 = tpu.memref_squeeze %227 : memref<1x8x8x384xbf16, #tpu.memory_space<vmem>> -> memref<8x8x384xbf16, #tpu.memory_space<vmem>>
      %229 = arith.index_cast %c5_i32 : i32 to index
      %c0_65 = arith.constant 0 : index
      %c0_66 = arith.constant 0 : index
      %230 = vector.load %228[%229, %c0_65, %c0_66] : memref<8x8x384xbf16, #tpu.memory_space<vmem>>, vector<1x8x384xbf16>
      %231 = vector.shape_cast %230 : vector<1x8x384xbf16> to vector<8x384xbf16>
      %232 = arith.extf %231 : vector<8x384xbf16> to vector<8x384xf32>
      %233 = arith.truncf %226 : vector<8x128xf32> to vector<8x128xbf16>
      %cst_67 = arith.constant dense<0.000000e+00> : vector<8x384xf32>
      %234 = tpu.matmul %233, %10, %cst_67 {dimension_numbers = #tpu.dot_dimension_numbers<[1], [0], [0], [1], [0, 0, 1, 1], [], []>} : vector<8x128xbf16>, vector<128x384xbf16>, vector<8x384xf32> -> vector<8x384xf32>
      %235 = vector.extract_strided_slice %232 {offsets = [0, 0], sizes = [8, 128], strides = [1, 1]} : vector<8x384xf32> to vector<8x128xf32>
      %236 = vector.extract_strided_slice %234 {offsets = [0, 0], sizes = [8, 128], strides = [1, 1]} : vector<8x384xf32> to vector<8x128xf32>
      %237 = arith.addf %235, %236 : vector<8x128xf32>
      %238 = arith.negf %237 : vector<8x128xf32>
      %239 = math.exp %238 : vector<8x128xf32>
      %cst_68 = arith.constant 1.000000e+00 : f32
      %240 = vector.broadcast %cst_68 : f32 to vector<8x128xf32>
      %241 = arith.addf %240, %239 : vector<8x128xf32>
      %242 = arith.divf %240, %241 : vector<8x128xf32>
      %243 = vector.extract_strided_slice %232 {offsets = [0, 128], sizes = [8, 128], strides = [1, 1]} : vector<8x384xf32> to vector<8x128xf32>
      %244 = vector.extract_strided_slice %234 {offsets = [0, 128], sizes = [8, 128], strides = [1, 1]} : vector<8x384xf32> to vector<8x128xf32>
      %245 = arith.addf %243, %244 : vector<8x128xf32>
      %246 = arith.negf %245 : vector<8x128xf32>
      %247 = math.exp %246 : vector<8x128xf32>
      %cst_69 = arith.constant 1.000000e+00 : f32
      %248 = vector.broadcast %cst_69 : f32 to vector<8x128xf32>
      %249 = arith.addf %248, %247 : vector<8x128xf32>
      %250 = arith.divf %248, %249 : vector<8x128xf32>
      %251 = vector.extract_strided_slice %232 {offsets = [0, 256], sizes = [8, 128], strides = [1, 1]} : vector<8x384xf32> to vector<8x128xf32>
      %252 = vector.extract_strided_slice %234 {offsets = [0, 256], sizes = [8, 128], strides = [1, 1]} : vector<8x384xf32> to vector<8x128xf32>
      %253 = vector.broadcast %12 : vector<1x128xf32> to vector<8x128xf32>
      %254 = arith.addf %252, %253 : vector<8x128xf32>
      %255 = arith.mulf %242, %254 : vector<8x128xf32>
      %256 = arith.addf %251, %255 : vector<8x128xf32>
      %257 = math.tanh %256 : vector<8x128xf32>
      %cst_70 = arith.constant 1.000000e+00 : f32
      %258 = vector.broadcast %cst_70 : f32 to vector<8x128xf32>
      %259 = arith.subf %258, %250 : vector<8x128xf32>
      %260 = arith.mulf %259, %257 : vector<8x128xf32>
      %261 = arith.mulf %250, %226 : vector<8x128xf32>
      %262 = arith.addf %260, %261 : vector<8x128xf32>
      %263 = arith.addi %8, %c5_i32 : i32
      %264 = vector.broadcast %263 : i32 to vector<8x1xi32>
      %265 = arith.cmpi slt, %264, %14 : vector<8x1xi32>
      %266 = vector.shape_cast %265 : vector<8x1xi1> to vector<8x1xi1>
      %267 = vector.broadcast %266 : vector<8x1xi1> to vector<8x128xi1>
      %268 = arith.select %267, %262, %226 : vector<8x128xi1>, vector<8x128xf32>
      %c6_i32 = arith.constant 6 : i32
      %c0_i32_71 = arith.constant 0 : i32
      %c0_i32_72 = arith.constant 0 : i32
      %c0_i32_73 = arith.constant 0 : i32
      %269 = tpu.memref_slice %arg2[%c0_i32_14, %c0_i32_71, %c0_i32_72, %c0_i32_73] : memref<1x8x8x384xbf16, #tpu.memory_space<vmem>> -> memref<1x8x8x384xbf16, #tpu.memory_space<vmem>>
      %270 = tpu.memref_squeeze %269 : memref<1x8x8x384xbf16, #tpu.memory_space<vmem>> -> memref<8x8x384xbf16, #tpu.memory_space<vmem>>
      %271 = arith.index_cast %c6_i32 : i32 to index
      %c0_74 = arith.constant 0 : index
      %c0_75 = arith.constant 0 : index
      %272 = vector.load %270[%271, %c0_74, %c0_75] : memref<8x8x384xbf16, #tpu.memory_space<vmem>>, vector<1x8x384xbf16>
      %273 = vector.shape_cast %272 : vector<1x8x384xbf16> to vector<8x384xbf16>
      %274 = arith.extf %273 : vector<8x384xbf16> to vector<8x384xf32>
      %275 = arith.truncf %268 : vector<8x128xf32> to vector<8x128xbf16>
      %cst_76 = arith.constant dense<0.000000e+00> : vector<8x384xf32>
      %276 = tpu.matmul %275, %10, %cst_76 {dimension_numbers = #tpu.dot_dimension_numbers<[1], [0], [0], [1], [0, 0, 1, 1], [], []>} : vector<8x128xbf16>, vector<128x384xbf16>, vector<8x384xf32> -> vector<8x384xf32>
      %277 = vector.extract_strided_slice %274 {offsets = [0, 0], sizes = [8, 128], strides = [1, 1]} : vector<8x384xf32> to vector<8x128xf32>
      %278 = vector.extract_strided_slice %276 {offsets = [0, 0], sizes = [8, 128], strides = [1, 1]} : vector<8x384xf32> to vector<8x128xf32>
      %279 = arith.addf %277, %278 : vector<8x128xf32>
      %280 = arith.negf %279 : vector<8x128xf32>
      %281 = math.exp %280 : vector<8x128xf32>
      %cst_77 = arith.constant 1.000000e+00 : f32
      %282 = vector.broadcast %cst_77 : f32 to vector<8x128xf32>
      %283 = arith.addf %282, %281 : vector<8x128xf32>
      %284 = arith.divf %282, %283 : vector<8x128xf32>
      %285 = vector.extract_strided_slice %274 {offsets = [0, 128], sizes = [8, 128], strides = [1, 1]} : vector<8x384xf32> to vector<8x128xf32>
      %286 = vector.extract_strided_slice %276 {offsets = [0, 128], sizes = [8, 128], strides = [1, 1]} : vector<8x384xf32> to vector<8x128xf32>
      %287 = arith.addf %285, %286 : vector<8x128xf32>
      %288 = arith.negf %287 : vector<8x128xf32>
      %289 = math.exp %288 : vector<8x128xf32>
      %cst_78 = arith.constant 1.000000e+00 : f32
      %290 = vector.broadcast %cst_78 : f32 to vector<8x128xf32>
      %291 = arith.addf %290, %289 : vector<8x128xf32>
      %292 = arith.divf %290, %291 : vector<8x128xf32>
      %293 = vector.extract_strided_slice %274 {offsets = [0, 256], sizes = [8, 128], strides = [1, 1]} : vector<8x384xf32> to vector<8x128xf32>
      %294 = vector.extract_strided_slice %276 {offsets = [0, 256], sizes = [8, 128], strides = [1, 1]} : vector<8x384xf32> to vector<8x128xf32>
      %295 = vector.broadcast %12 : vector<1x128xf32> to vector<8x128xf32>
      %296 = arith.addf %294, %295 : vector<8x128xf32>
      %297 = arith.mulf %284, %296 : vector<8x128xf32>
      %298 = arith.addf %293, %297 : vector<8x128xf32>
      %299 = math.tanh %298 : vector<8x128xf32>
      %cst_79 = arith.constant 1.000000e+00 : f32
      %300 = vector.broadcast %cst_79 : f32 to vector<8x128xf32>
      %301 = arith.subf %300, %292 : vector<8x128xf32>
      %302 = arith.mulf %301, %299 : vector<8x128xf32>
      %303 = arith.mulf %292, %268 : vector<8x128xf32>
      %304 = arith.addf %302, %303 : vector<8x128xf32>
      %305 = arith.addi %8, %c6_i32 : i32
      %306 = vector.broadcast %305 : i32 to vector<8x1xi32>
      %307 = arith.cmpi slt, %306, %14 : vector<8x1xi32>
      %308 = vector.shape_cast %307 : vector<8x1xi1> to vector<8x1xi1>
      %309 = vector.broadcast %308 : vector<8x1xi1> to vector<8x128xi1>
      %310 = arith.select %309, %304, %268 : vector<8x128xi1>, vector<8x128xf32>
      %c7_i32 = arith.constant 7 : i32
      %c0_i32_80 = arith.constant 0 : i32
      %c0_i32_81 = arith.constant 0 : i32
      %c0_i32_82 = arith.constant 0 : i32
      %311 = tpu.memref_slice %arg2[%c0_i32_14, %c0_i32_80, %c0_i32_81, %c0_i32_82] : memref<1x8x8x384xbf16, #tpu.memory_space<vmem>> -> memref<1x8x8x384xbf16, #tpu.memory_space<vmem>>
      %312 = tpu.memref_squeeze %311 : memref<1x8x8x384xbf16, #tpu.memory_space<vmem>> -> memref<8x8x384xbf16, #tpu.memory_space<vmem>>
      %313 = arith.index_cast %c7_i32 : i32 to index
      %c0_83 = arith.constant 0 : index
      %c0_84 = arith.constant 0 : index
      %314 = vector.load %312[%313, %c0_83, %c0_84] : memref<8x8x384xbf16, #tpu.memory_space<vmem>>, vector<1x8x384xbf16>
      %315 = vector.shape_cast %314 : vector<1x8x384xbf16> to vector<8x384xbf16>
      %316 = arith.extf %315 : vector<8x384xbf16> to vector<8x384xf32>
      %317 = arith.truncf %310 : vector<8x128xf32> to vector<8x128xbf16>
      %cst_85 = arith.constant dense<0.000000e+00> : vector<8x384xf32>
      %318 = tpu.matmul %317, %10, %cst_85 {dimension_numbers = #tpu.dot_dimension_numbers<[1], [0], [0], [1], [0, 0, 1, 1], [], []>} : vector<8x128xbf16>, vector<128x384xbf16>, vector<8x384xf32> -> vector<8x384xf32>
      %319 = vector.extract_strided_slice %316 {offsets = [0, 0], sizes = [8, 128], strides = [1, 1]} : vector<8x384xf32> to vector<8x128xf32>
      %320 = vector.extract_strided_slice %318 {offsets = [0, 0], sizes = [8, 128], strides = [1, 1]} : vector<8x384xf32> to vector<8x128xf32>
      %321 = arith.addf %319, %320 : vector<8x128xf32>
      %322 = arith.negf %321 : vector<8x128xf32>
      %323 = math.exp %322 : vector<8x128xf32>
      %cst_86 = arith.constant 1.000000e+00 : f32
      %324 = vector.broadcast %cst_86 : f32 to vector<8x128xf32>
      %325 = arith.addf %324, %323 : vector<8x128xf32>
      %326 = arith.divf %324, %325 : vector<8x128xf32>
      %327 = vector.extract_strided_slice %316 {offsets = [0, 128], sizes = [8, 128], strides = [1, 1]} : vector<8x384xf32> to vector<8x128xf32>
      %328 = vector.extract_strided_slice %318 {offsets = [0, 128], sizes = [8, 128], strides = [1, 1]} : vector<8x384xf32> to vector<8x128xf32>
      %329 = arith.addf %327, %328 : vector<8x128xf32>
      %330 = arith.negf %329 : vector<8x128xf32>
      %331 = math.exp %330 : vector<8x128xf32>
      %cst_87 = arith.constant 1.000000e+00 : f32
      %332 = vector.broadcast %cst_87 : f32 to vector<8x128xf32>
      %333 = arith.addf %332, %331 : vector<8x128xf32>
      %334 = arith.divf %332, %333 : vector<8x128xf32>
      %335 = vector.extract_strided_slice %316 {offsets = [0, 256], sizes = [8, 128], strides = [1, 1]} : vector<8x384xf32> to vector<8x128xf32>
      %336 = vector.extract_strided_slice %318 {offsets = [0, 256], sizes = [8, 128], strides = [1, 1]} : vector<8x384xf32> to vector<8x128xf32>
      %337 = vector.broadcast %12 : vector<1x128xf32> to vector<8x128xf32>
      %338 = arith.addf %336, %337 : vector<8x128xf32>
      %339 = arith.mulf %326, %338 : vector<8x128xf32>
      %340 = arith.addf %335, %339 : vector<8x128xf32>
      %341 = math.tanh %340 : vector<8x128xf32>
      %cst_88 = arith.constant 1.000000e+00 : f32
      %342 = vector.broadcast %cst_88 : f32 to vector<8x128xf32>
      %343 = arith.subf %342, %334 : vector<8x128xf32>
      %344 = arith.mulf %343, %341 : vector<8x128xf32>
      %345 = arith.mulf %334, %310 : vector<8x128xf32>
      %346 = arith.addf %344, %345 : vector<8x128xf32>
      %347 = arith.addi %8, %c7_i32 : i32
      %348 = vector.broadcast %347 : i32 to vector<8x1xi32>
      %349 = arith.cmpi slt, %348, %14 : vector<8x1xi32>
      %350 = vector.shape_cast %349 : vector<8x1xi1> to vector<8x1xi1>
      %351 = vector.broadcast %350 : vector<8x1xi1> to vector<8x128xi1>
      %352 = arith.select %351, %346, %310 : vector<8x128xi1>, vector<8x128xf32>
      %c8_i32_89 = arith.constant 8 : i32
      %c0_90 = arith.constant 0 : index
      %c0_91 = arith.constant 0 : index
      %c0_92 = arith.constant 0 : index
      %353 = vector.load %arg6[%c0_90, %c0_91, %c0_92] : memref<1x8x128xf32, #tpu.memory_space<vmem>>, vector<1x8x128xf32>
      %354 = vector.shape_cast %353 : vector<1x8x128xf32> to vector<8x128xf32>
      %355 = vector.shape_cast %352 : vector<8x128xf32> to vector<1x8x128xf32>
      tpu.vector_store %arg6[%c0_90, %c0_91, %c0_92], %355 {strides = array<i32>} : memref<1x8x128xf32, #tpu.memory_space<vmem>>, vector<1x8x128xf32>,
    } else {
    }
    return
  }
  func.func @transform_0(%arg0: i32, %arg1: i32) -> (i32, i32, i32, i32) {
    %c0_i32 = arith.constant 0 : i32
    %0 = arith.cmpi eq, %arg0, %c0_i32 : i32
    %c1_i32 = arith.constant 1 : i32
    %c2_i32 = arith.constant 2 : i32
    %1 = arith.select %0, %c1_i32, %c2_i32 : i32
    %c1_i32_0 = arith.constant 1 : i32
    %2 = arith.subi %1, %c1_i32_0 : i32
    %3 = arith.minsi %arg1, %2 : i32
    %c0_i32_1 = arith.constant 0 : i32
    %c0_i32_2 = arith.constant 0 : i32
    %c0_i32_3 = arith.constant 0 : i32
    return %arg0, %3, %c0_i32_1, %c0_i32_2 : i32, i32, i32, i32
  }
  func.func @transform_1(%arg0: i32, %arg1: i32) -> (i32, i32, i32) {
    %c0_i32 = arith.constant 0 : i32
    %c0_i32_0 = arith.constant 0 : i32
    %c0_i32_1 = arith.constant 0 : i32
    return %arg0, %c0_i32, %c0_i32_0 : i32, i32, i32
  }
  func.func @transform_2(%arg0: i32, %arg1: i32) -> (i32, i32, i32) {
    %c0_i32 = arith.constant 0 : i32
    %c0_i32_0 = arith.constant 0 : i32
    %c0_i32_1 = arith.constant 0 : i32
    return %arg0, %c0_i32, %c0_i32_0 : i32, i32, i32
  }
  func.func @transform_3(%arg0: i32, %arg1: i32) -> (i32, i32, i32) {
    %c0_i32 = arith.constant 0 : i32
    %c0_i32_0 = arith.constant 0 : i32
    %c0_i32_1 = arith.constant 0 : i32
    return %arg0, %c0_i32, %c0_i32_0 : i32, i32, i32
  }
  func.func @transform_4(%arg0: i32, %arg1: i32) -> (i32, i32, i32) {
    %c0_i32 = arith.constant 0 : i32
    %c0_i32_0 = arith.constant 0 : i32
    %c0_i32_1 = arith.constant 0 : i32
    return %arg0, %c0_i32, %c0_i32_0 : i32, i32, i32
  }
}

</mosaic_0001>

<bundles_post_ra>
// kernel: parallel_encoders_forward.2
= control target key start
LH: loop header
LB: loop body
LE: loop exit
PB: predicated region body
PF: predicated region fallthrough
CT: control target
= control target key end

     0   :  { %s944_s12 = smov 0   ;;  %s946_s13 = smov 0   ;;  %s1111_s0 = inlined_call_operand.vmem [shape: bf16[2,128,32], index: 0, kind: input, shape index: {}]   ;;  %s1112_s1 = inlined_call_operand.vmem [shape: bf16[2,32,384], index: 1, kind: input, shape index: {}]   ;;  %s1113_s2 = inlined_call_operand.vmem [shape: f32[2,1,384], index: 2, kind: input, shape index: {}]   ;;  %s1114_s3 = inlined_call_operand.vmem [shape: bf16[2,128,384], index: 3, kind: output, shape index: {}]  }
   0x1   :  { %s948_s14 = smov 0  }
   0x2 LB: > { %s25_s15 = sadd.s32 1, %s918_s13  ;;  %p765_p0 = scmp.ge.s32.totalorder %s922_s14, 1  ;;  %s922_s14 = sphi %s948_s14, %s13_s14   ;;  %s918_s13 = sphi %s946_s13, %s1116_s13   ;;  %s914_s12 = sphi %s944_s12, %s1115_s12  }
   0x3   : > { %p27_p1 = scmp.ge.s32.totalorder %s25_s15, 2  ;;  %p185_p2 = scmp.lt.s32.totalorder %s922_s14, 3 }
   0x5   : > { %s1118_s15 = smov (%p27_p1, %s25_s15), 0  ;;  %p186_p3 = pnand %p765_p0, %p185_p2 }
   0x6   : > { %p232_p4 = scmp.lt.s32.totalorder (!%p186_p3), %s914_s12, 1 }
   0x7   : > { %189 = sbr.rel (%p186_p3) target bundleno = 253 (0xfd), region = 32 }
   0xc   : > { %s1120_s12 = smov (!%p232_p4, %s914_s12), 1  ;;  %vm372_vm0 = vcmask 261120  }
   0xd   : > { %s873_s16 = smul.u32 48, %s1120_s12  ;;  %s852_s20 = sshll.u32 %s1120_s12, 6 }
   0xe   : > { %s972_s23 = scalar_lea.vmem %s1111_s0, %s852_s20  ;;  %s874_s24 = smul.u32 3, %s1120_s12 }
   0xf   : > { %s247_s19 = scalar_lea.vmem %s1112_s1, %s873_s16  ;;  %v853_v18 = vld [vmem:[%s972_s23] sm:$0xff]  ;;  %v859_v19 = vld [vmem:[%s972_s23 + $0x30] sm:$0xff]  ;;  %v854_v20 = vld [vmem:[%s972_s23 + $0x8] sm:$0xff]  ;;  %s875_s28 = smul.u32 192, %s1120_s12 }
  0x10   : > { %v816_v0 = vld [vmem:[%s247_s19 + $0x18] sm:$0xf]  ;;  %v865_v1 = vld [vmem:[%s247_s19 + $0x20] sm:$0xf0]  ;;  %v864_v2 = vld [vmem:[%s247_s19 + $0x1c] sm:$0xf]  ;;  %s251_s27 = scalar_lea.vmem %s1113_s2, %s874_s24 }
  0x11   : > { %v817_v3 = vor.u32 %v865_v1, %v816_v0  ;;  %v818_v4 = vld [vmem:[%s247_s19 + $0x24] sm:$0xf0]  ;;  %v824_v5 = vld [vmem:[%s247_s19 + $0x20] sm:$0xf]  ;;  %v866_v6 = vld [vmem:[%s247_s19 + $0x28] sm:$0xf0]  ;;  %s1020_s4 = scalar_lea.vmem %s1114_s3, %s875_s28 }
  0x12   : > { %v821_v7 = vor.u32 %v864_v2, %v818_v4  ;;  %v825_v8 = vor.u32 %v866_v6, %v824_v5  ;;  %v804_v9 = vld [vmem:[%s247_s19] sm:$0xf]  ;;  %v862_v10 = vld [vmem:[%s247_s19 + $0x8] sm:$0xf0]  ;;  %v861_v11 = vld [vmem:[%s247_s19 + $0x4] sm:$0xf] }
  0x13   : > { %403 = vmatpush.bf16.msra.mxu0 %v817_v3  ;;  %867 = vmatpush.bf16.msra.mxu3 %v817_v3  ;;  %v805_v12 = vor.u32 %v862_v10, %v804_v9  ;;  %v806_v13 = vld [vmem:[%s247_s19 + $0xc] sm:$0xf0]  ;;  %v812_v14 = vld [vmem:[%s247_s19 + $0x8] sm:$0xf]  ;;  %v863_v15 = vld [vmem:[%s247_s19 + $0x10] sm:$0xf0] }
  0x14   : > { %452 = vmatpush.bf16.msra.mxu1 %v821_v7  ;;  %501 = vmatpush.bf16.msra.mxu2 %v825_v8  ;;  %v809_v16 = vor.u32 %v861_v11, %v806_v13  ;;  %v813_v17 = vor.u32 %v863_v15, %v812_v14  ;;  %v860_v21 = vld [vmem:[%s972_s23 + $0x38] sm:$0xff]  ;;  %v855_v22 = vld [vmem:[%s972_s23 + $0x10] sm:$0xff]  ;;  %v857_v24 = vld [vmem:[%s972_s23 + $0x20] sm:$0xff] }
  0x15   : > { %v856_v23 = vld [vmem:[%s972_s23 + $0x18] sm:$0xff]  ;;  %v858_v25 = vld [vmem:[%s972_s23 + $0x28] sm:$0xff]  ;;  %v292_v26 = vld [vmem:[%s251_s27] sm:$0x7] }
  0x16   : > { %v1010_v27 = vperm.slane %v292_v26, 0  ;;  %v1012_v28 = vperm.slane %v292_v26, 1  ;;  %v1022_v34 = vperm.slane %v292_v26, 2 }
  0x17   : > { %404 = vmatpush.bf16.msra.mxu0 %v805_v12  ;;  %868 = vmatpush.bf16.msra.mxu3 %v805_v12 }
  0x18   : > { %453 = vmatpush.bf16.msra.mxu1 %v809_v16  ;;  %502 = vmatpush.bf16.msra.mxu2 %v813_v17 }
  0x1a   : > { %826 = vmatmul.msk.bf16.vlgmr.msra.gmra.mxu0 %vm372_vm0, %v853_v18  ;;  %832 = vmatmul.msk.bf16.vlgmr.msra.gmra.mxu3 %vm372_vm0, %v859_v19 }
  0x1b   : > { %869 = vmatpush.bf16.msrb.mxu3 %v821_v7  ;;  %834 = vmatmul.msk.bf16.vlgmr.msra.gmra.mxu1 %vm372_vm0, %v853_v18 }
  0x1c   : > { %842 = vmatmul.msk.bf16.vlgmr.msra.gmra.mxu2 %vm372_vm0, %v853_v18 }
  0x1f   : > { %870 = vmatpush.bf16.msrb.mxu3 %v809_v16 }
  0x23   : > { %871 = vmatpush.bf16.msra.mxu3 %v825_v8 }
  0x27   : > { %872 = vmatpush.bf16.msra.mxu3 %v813_v17 }
  0x2a   : > { %827 = vmatmul.msk.bf16.gmra.mxu0 %vm372_vm0, %v854_v20  ;;  %833 = vmatmul.msk.bf16.gmra.mxu3 %vm372_vm0, %v860_v21 }
  0x2b   : > { %835 = vmatmul.msk.bf16.gmra.mxu1 %vm372_vm0, %v854_v20 }
  0x2c   : > { %843 = vmatmul.msk.bf16.gmra.mxu2 %vm372_vm0, %v854_v20 }
  0x3a   : > { %828 = vmatmul.msk.bf16.gmra.mxu0 %vm372_vm0, %v855_v22  ;;  %840 = vmatmul.msk.bf16.vlgmr.msrb.gmra.mxu3 %vm372_vm0, %v859_v19 }
  0x3b   : > { %836 = vmatmul.msk.bf16.gmra.mxu1 %vm372_vm0, %v855_v22 }
  0x3c   : > { %844 = vmatmul.msk.bf16.gmra.mxu2 %vm372_vm0, %v855_v22 }
  0x4a   : > { %829 = vmatmul.msk.bf16.gmra.mxu0 %vm372_vm0, %v856_v23  ;;  %841 = vmatmul.msk.bf16.gmra.mxu3 %vm372_vm0, %v860_v21 }
  0x4b   : > { %837 = vmatmul.msk.bf16.gmra.mxu1 %vm372_vm0, %v856_v23 }
  0x4c   : > { %845 = vmatmul.msk.bf16.gmra.mxu2 %vm372_vm0, %v856_v23 }
  0x5a   : > { %830 = vmatmul.msk.bf16.gmra.mxu0 %vm372_vm0, %v857_v24  ;;  %848 = vmatmul.msk.bf16.vlgmr.msra.gmra.mxu3 %vm372_vm0, %v859_v19 }
  0x5b   : > { %838 = vmatmul.msk.bf16.gmra.mxu1 %vm372_vm0, %v857_v24 }
  0x5c   : > { %846 = vmatmul.msk.bf16.gmra.mxu2 %vm372_vm0, %v857_v24 }
  0x6a   : > { %831 = vmatmul.msk.bf16.gmra.mxu0 %vm372_vm0, %v858_v25  ;;  %849 = vmatmul.msk.bf16.gmra.mxu3 %vm372_vm0, %v860_v21 }
  0x6b   : > { %839 = vmatmul.msk.bf16.gmra.mxu1 %vm372_vm0, %v858_v25 }
  0x6c   : > { %847 = vmatmul.msk.bf16.gmra.mxu2 %vm372_vm0, %v858_v25 }
  0x97   : > { %v406_v29 = vpop.f32.mrf.mxu0 }
  0x98   : > { %v407_v30 = vadd.f32 %v406_v29, %v1010_v27  ;;  %v455_v31 = vpop.f32.mrf.mxu1 }
  0x99   : > { %v456_v32 = vadd.f32 %v455_v31, %v1012_v28 }
  0x9b   : > { %v544_v33 = vpack.c.bf16 %v456_v32, %v407_v30 }
  0x9d   : > { %576 = vst [vmem:[%s1020_s4] sm:$0xff] %v544_v33  ;;  %v436_v35 = vpop.f32.mrf.mxu3 }
  0x9e   : > { %v437_v8 = vadd.f32 %v436_v35, %v1010_v27 }
  0x9f   : > { %v504_v36 = vpop.f32.mrf.mxu2  ;;  %v408_v38 = vpop.f32.mrf.mxu0 }
  0xa0   : > { %v505_v37 = vadd.f32 %v504_v36, %v1022_v34  ;;  %v409_v39 = vadd.f32 %v408_v38, %v1010_v27  ;;  %v457_v40 = vpop.f32.mrf.mxu1 }
  0xa1   : > { %v458_v42 = vadd.f32 %v457_v40, %v1012_v28 }
  0xa2   : > { %v545_v41 = vpack.c.bf16 %v505_v37, %v505_v37 }
  0xa3   : > { %v546_v43 = vpack.c.bf16 %v458_v42, %v409_v39 }
  0xa4   : > { %577 = vst [vmem:[%s1020_s4 + $0x8] sm:$0xf] %v545_v41 }
  0xa5   : > { %578 = vst [vmem:[%s1020_s4 + $0xc] sm:$0xff] %v546_v43  ;;  %v438_v44 = vpop.f32.mrf.mxu3 }
  0xa6   : > { %v439_v20 = vadd.f32 %v438_v44, %v1010_v27 }
  0xa7   : > { %v506_v45 = vpop.f32.mrf.mxu2  ;;  %v411_v47 = vpop.f32.mrf.mxu0 }
  0xa8   : > { %v507_v46 = vadd.f32 %v506_v45, %v1022_v34  ;;  %v412_v48 = vadd.f32 %v411_v47, %v1010_v27  ;;  %v460_v49 = vpop.f32.mrf.mxu1 }
  0xa9   : > { %v461_v51 = vadd.f32 %v460_v49, %v1012_v28 }
  0xaa   : > { %v547_v50 = vpack.c.bf16 %v507_v46, %v507_v46 }
  0xab   : > { %v548_v52 = vpack.c.bf16 %v461_v51, %v412_v48 }
  0xac   : > { %579 = vst [vmem:[%s1020_s4 + $0x14] sm:$0xf] %v547_v50 }
  0xad   : > { %580 = vst [vmem:[%s1020_s4 + $0x18] sm:$0xff] %v548_v52  ;;  %v441_v53 = vpop.f32.mrf.mxu3 }
  0xae   : > { %v442_v35 = vadd.f32 %v441_v53, %v1010_v27 }
  0xaf   : > { %v509_v54 = vpop.f32.mrf.mxu2  ;;  %v413_v56 = vpop.f32.mrf.mxu0 }
  0xb0   : > { %v510_v55 = vadd.f32 %v509_v54, %v1022_v34  ;;  %v414_v57 = vadd.f32 %v413_v56, %v1010_v27  ;;  %v462_v58 = vpop.f32.mrf.mxu1 }
  0xb1   : > { %v463_v60 = vadd.f32 %v462_v58, %v1012_v28 }
  0xb2   : > { %v549_v59 = vpack.c.bf16 %v510_v55, %v510_v55 }
  0xb3   : > { %v550_v61 = vpack.c.bf16 %v463_v60, %v414_v57 }
  0xb4   : > { %581 = vst [vmem:[%s1020_s4 + $0x20] sm:$0xf] %v549_v59 }
  0xb5   : > { %582 = vst [vmem:[%s1020_s4 + $0x24] sm:$0xff] %v550_v61  ;;  %v443_v62 = vpop.f32.mrf.mxu3 }
  0xb6   : > { %v444_v47 = vadd.f32 %v443_v62, %v1010_v27 }
  0xb7   : > { %v511_v63 = vpop.f32.mrf.mxu2  ;;  %v416_v1 = vpop.f32.mrf.mxu0 }
  0xb8   : > { %v512_v0 = vadd.f32 %v511_v63, %v1022_v34  ;;  %v417_v2 = vadd.f32 %v416_v1, %v1010_v27  ;;  %v465_v3 = vpop.f32.mrf.mxu1 }
  0xb9   : > { %v466_v5 = vadd.f32 %v465_v3, %v1012_v28 }
  0xba   : > { %v551_v4 = vpack.c.bf16 %v512_v0, %v512_v0 }
  0xbb   : > { %v552_v6 = vpack.c.bf16 %v466_v5, %v417_v2 }
  0xbc   : > { %583 = vst [vmem:[%s1020_s4 + $0x2c] sm:$0xf] %v551_v4 }
  0xbd   : > { %584 = vst [vmem:[%s1020_s4 + $0x30] sm:$0xff] %v552_v6  ;;  %v485_v7 = vpop.f32.mrf.mxu3 }
  0xbe   : > { %v486_v9 = vadd.f32 %v485_v7, %v1012_v28 }
  0xbf   : > { %v514_v10 = vpop.f32.mrf.mxu2  ;;  %v418_v12 = vpop.f32.mrf.mxu0 }
  0xc0   : > { %v515_v11 = vadd.f32 %v514_v10, %v1022_v34  ;;  %v568_v13 = vpack.c.bf16 %v486_v9, %v437_v8  ;;  %v419_v14 = vadd.f32 %v418_v12, %v1010_v27  ;;  %v467_v15 = vpop.f32.mrf.mxu1 }
  0xc1   : > { %v468_v17 = vadd.f32 %v467_v15, %v1012_v28 }
  0xc2   : > { %v553_v16 = vpack.c.bf16 %v515_v11, %v515_v11  ;;  %600 = vst [vmem:[%s1020_s4 + $0x90] sm:$0xff] %v568_v13 }
  0xc3   : > { %v554_v18 = vpack.c.bf16 %v468_v17, %v419_v14 }
  0xc4   : > { %585 = vst [vmem:[%s1020_s4 + $0x38] sm:$0xf] %v553_v16 }
  0xc5   : > { %586 = vst [vmem:[%s1020_s4 + $0x3c] sm:$0xff] %v554_v18  ;;  %v487_v19 = vpop.f32.mrf.mxu3 }
  0xc6   : > { %v488_v21 = vadd.f32 %v487_v19, %v1012_v28 }
  0xc7   : > { %v516_v22 = vpop.f32.mrf.mxu2  ;;  %v421_v24 = vpop.f32.mrf.mxu0 }
  0xc8   : > { %v517_v23 = vadd.f32 %v516_v22, %v1022_v34  ;;  %v570_v25 = vpack.c.bf16 %v488_v21, %v439_v20  ;;  %v422_v26 = vadd.f32 %v421_v24, %v1010_v27  ;;  %v470_v29 = vpop.f32.mrf.mxu1 }
  0xc9   : > { %v471_v31 = vadd.f32 %v470_v29, %v1012_v28 }
  0xca   : > { %v555_v30 = vpack.c.bf16 %v517_v23, %v517_v23  ;;  %602 = vst [vmem:[%s1020_s4 + $0x9c] sm:$0xff] %v570_v25 }
  0xcb   : > { %v556_v32 = vpack.c.bf16 %v471_v31, %v422_v26 }
  0xcc   : > { %587 = vst [vmem:[%s1020_s4 + $0x44] sm:$0xf] %v555_v30 }
  0xcd   : > { %588 = vst [vmem:[%s1020_s4 + $0x48] sm:$0xff] %v556_v32  ;;  %v490_v33 = vpop.f32.mrf.mxu3 }
  0xce   : > { %v491_v36 = vadd.f32 %v490_v33, %v1012_v28 }
  0xcf   : > { %v519_v37 = vpop.f32.mrf.mxu2  ;;  %v423_v39 = vpop.f32.mrf.mxu0 }
  0xd0   : > { %v520_v38 = vadd.f32 %v519_v37, %v1022_v34  ;;  %v572_v40 = vpack.c.bf16 %v491_v36, %v442_v35  ;;  %v424_v41 = vadd.f32 %v423_v39, %v1010_v27  ;;  %v472_v42 = vpop.f32.mrf.mxu1 }
  0xd1   : > { %v473_v44 = vadd.f32 %v472_v42, %v1012_v28 }
  0xd2   : > { %v557_v43 = vpack.c.bf16 %v520_v38, %v520_v38  ;;  %604 = vst [vmem:[%s1020_s4 + $0xa8] sm:$0xff] %v572_v40 }
  0xd3   : > { %v558_v45 = vpack.c.bf16 %v473_v44, %v424_v41 }
  0xd4   : > { %589 = vst [vmem:[%s1020_s4 + $0x50] sm:$0xf] %v557_v43 }
  0xd5   : > { %590 = vst [vmem:[%s1020_s4 + $0x54] sm:$0xff] %v558_v45  ;;  %v492_v46 = vpop.f32.mrf.mxu3 }
  0xd6   : > { %v493_v48 = vadd.f32 %v492_v46, %v1012_v28 }
  0xd7   : > { %v521_v49 = vpop.f32.mrf.mxu2  ;;  %v426_v51 = vpop.f32.mrf.mxu0 }
  0xd8   : > { %v522_v50 = vadd.f32 %v521_v49, %v1022_v34  ;;  %v574_v52 = vpack.c.bf16 %v493_v48, %v444_v47  ;;  %v427_v53 = vadd.f32 %v426_v51, %v1010_v27  ;;  %v475_v54 = vpop.f32.mrf.mxu1 }
  0xd9   : > { %v476_v56 = vadd.f32 %v475_v54, %v1012_v28 }
  0xda   : > { %v559_v55 = vpack.c.bf16 %v522_v50, %v522_v50  ;;  %606 = vst [vmem:[%s1020_s4 + $0xb4] sm:$0xff] %v574_v52 }
  0xdb   : > { %v560_v57 = vpack.c.bf16 %v476_v56, %v427_v53 }
  0xdc   : > { %591 = vst [vmem:[%s1020_s4 + $0x5c] sm:$0xf] %v559_v55 }
  0xdd   : > { %592 = vst [vmem:[%s1020_s4 + $0x60] sm:$0xff] %v560_v57  ;;  %v534_v58 = vpop.f32.mrf.mxu3 }
  0xde   : > { %v535_v60 = vadd.f32 %v534_v58, %v1022_v34 }
  0xdf   : > { %v524_v59 = vpop.f32.mrf.mxu2  ;;  %v428_v62 = vpop.f32.mrf.mxu0 }
  0xe0   : > { %v525_v61 = vadd.f32 %v524_v59, %v1022_v34  ;;  %v569_v63 = vpack.c.bf16 %v535_v60, %v535_v60  ;;  %v429_v0 = vadd.f32 %v428_v62, %v1010_v27  ;;  %v477_v1 = vpop.f32.mrf.mxu1 }
  0xe1   : > { %v478_v3 = vadd.f32 %v477_v1, %v1012_v28 }
  0xe2   : > { %v561_v2 = vpack.c.bf16 %v525_v61, %v525_v61  ;;  %601 = vst [vmem:[%s1020_s4 + $0x98] sm:$0xf] %v569_v63 }
  0xe3   : > { %v562_v4 = vpack.c.bf16 %v478_v3, %v429_v0 }
  0xe4   : > { %593 = vst [vmem:[%s1020_s4 + $0x68] sm:$0xf] %v561_v2 }
  0xe5   : > { %594 = vst [vmem:[%s1020_s4 + $0x6c] sm:$0xff] %v562_v4  ;;  %v536_v5 = vpop.f32.mrf.mxu3 }
  0xe6   : > { %v537_v7 = vadd.f32 %v536_v5, %v1022_v34 }
  0xe7   : > { %v526_v6 = vpop.f32.mrf.mxu2  ;;  %v431_v9 = vpop.f32.mrf.mxu0 }
  0xe8   : > { %v527_v8 = vadd.f32 %v526_v6, %v1022_v34  ;;  %v571_v10 = vpack.c.bf16 %v537_v7, %v537_v7  ;;  %v432_v11 = vadd.f32 %v431_v9, %v1010_v27  ;;  %v480_v12 = vpop.f32.mrf.mxu1 }
  0xe9   : > { %v481_v14 = vadd.f32 %v480_v12, %v1012_v28 }
  0xea   : > { %v563_v13 = vpack.c.bf16 %v527_v8, %v527_v8  ;;  %603 = vst [vmem:[%s1020_s4 + $0xa4] sm:$0xf] %v571_v10 }
  0xeb   : > { %v564_v15 = vpack.c.bf16 %v481_v14, %v432_v11 }
  0xec   : > { %595 = vst [vmem:[%s1020_s4 + $0x74] sm:$0xf] %v563_v13 }
  0xed   : > { %596 = vst [vmem:[%s1020_s4 + $0x78] sm:$0xff] %v564_v15  ;;  %v539_v16 = vpop.f32.mrf.mxu3 }
  0xee   : > { %v540_v18 = vadd.f32 %v539_v16, %v1022_v34 }
  0xef   : > { %v529_v17 = vpop.f32.mrf.mxu2  ;;  %v433_v20 = vpop.f32.mrf.mxu0 }
  0xf0   : > { %v530_v19 = vadd.f32 %v529_v17, %v1022_v34  ;;  %v573_v21 = vpack.c.bf16 %v540_v18, %v540_v18  ;;  %v434_v22 = vadd.f32 %v433_v20, %v1010_v27  ;;  %v482_v23 = vpop.f32.mrf.mxu1 }
  0xf1   : > { %v483_v25 = vadd.f32 %v482_v23, %v1012_v28 }
  0xf2   : > { %v565_v24 = vpack.c.bf16 %v530_v19, %v530_v19  ;;  %605 = vst [vmem:[%s1020_s4 + $0xb0] sm:$0xf] %v573_v21 }
  0xf3   : > { %v566_v26 = vpack.c.bf16 %v483_v25, %v434_v22 }
  0xf4   : > { %597 = vst [vmem:[%s1020_s4 + $0x80] sm:$0xf] %v565_v24 }
  0xf5   : > { %598 = vst [vmem:[%s1020_s4 + $0x84] sm:$0xff] %v566_v26  ;;  %v541_v29 = vpop.f32.mrf.mxu3 }
  0xf6   : > { %v542_v31 = vadd.f32 %v541_v29, %v1022_v34 }
  0xf7   : > { %v531_v30 = vpop.f32.mrf.mxu2 }
  0xf8   : > { %v532_v32 = vadd.f32 %v531_v30, %v1022_v34  ;;  %v575_v33 = vpack.c.bf16 %v542_v31, %v542_v31 }
  0xfa   : > { %v567_v35 = vpack.c.bf16 %v532_v32, %v532_v32  ;;  %607 = vst [vmem:[%s1020_s4 + $0xbc] sm:$0xf] %v575_v33 }
  0xfc   : > { %599 = vst [vmem:[%s1020_s4 + $0x8c] sm:$0xf] %v567_v35 }
  0xfd PF: > { %s13_s14 = sadd.s32 1, %s922_s14   ;;  %s1115_s12 = smov %s918_s13 }
  0xfe   : > { %p10_p5 = scmp.ge.s32.totalorder %s13_s14, 4   ;;  %s1116_s13 = smov %s1118_s15 }
 0x100   :  { %12 = sbr.rel (!%p10_p5) target bundleno = 2 (0x2), region = 76 }

// kernel: parallel_encoders_forward.3
= control target key start
LH: loop header
LB: loop body
LE: loop exit
PB: predicated region body
PF: predicated region fallthrough
CT: control target
= control target key end

     0   :  { %s1785_s15 = smov 0   ;;  %s1787_s16 = smov 0   ;;  %s2263_s0 = inlined_call_operand.vmem [shape: bf16[2,16,8,384], index: 0, kind: input, shape index: {}]   ;;  %s2264_s1 = inlined_call_operand.vmem [shape: s32[2,8,1], index: 1, kind: input, shape index: {}]   ;;  %s2265_s2 = inlined_call_operand.vmem [shape: bf16[2,128,384], index: 2, kind: input, shape index: {}]   ;;  %s2266_s3 = inlined_call_operand.vmem [shape: f32[2,1,128], index: 3, kind: input, shape index: {}]   ;;  %s2267_s4 = inlined_call_operand.vmem [shape: f32[2,8,128], index: 4, kind: output, shape index: {}]  }
   0x1   :  { %s1789_s17 = smov 0   ;;  %s1791_s18 = smov 0  }
   0x2   :  { %s1793_s19 = smov 0  }
   0x3 LB: > { %s23_s20 = sadd.s32 1, %s1748_s17  ;;  %s26_s21 = sadd.s32 1, %s1752_s18  ;;  %s1756_s19 = sphi %s1793_s19, %s14_s19   ;;  %s1752_s18 = sphi %s1791_s18, %s2271_s18   ;;  %s1748_s17 = sphi %s1789_s17, %s2270_s17   ;;  %s1744_s16 = sphi %s1787_s16, %s2269_s16   ;;  %s1740_s15 = sphi %s1785_s15, %s2268_s15  }
   0x4   : > { %p24_p0 = scmp.ge.s32.totalorder %s23_s20, 2  ;;  %p1426_p1 = scmp.ge.s32.totalorder %s1756_s19, 1 }
   0x5   : > { %p229_p2 = scmp.lt.s32.totalorder %s1756_s19, 5 }
   0x6   : > { %s2273_s20 = smov (%p24_p0, %s23_s20), 0  ;;  %s2275_s21 = smov (!%p24_p0, %s26_s21), %s1752_s18 }
   0x7   : > { %p230_p3 = pnand %p1426_p1, %p229_p2  ;;  %p28_p4 = scmp.ge.s32.totalorder %s2275_s21, 2 }
   0x8   : > { %p276_p5 = scmp.eq.s32.totalorder (!%p230_p3), %s1744_s16, 0  ;;  %p282_p6 = scmp.lt.s32.totalorder (!%p230_p3), %s1744_s16, 1 }
   0x9   : > { %s2277_s21 = smov (%p28_p4, %s2275_s21), 0  ;;  %233 = sbr.rel (%p230_p3) target bundleno = 1489 (0x5d1), region = 36 }
   0xa   : > { %p1433_p9 = scmp.ne.s32.totalorder (!%p230_p3), %s1740_s15, 0 }
   0xe   : > { %s277_s22 = scalar_select %p276_p5, 1, 2 }
   0xf   : > { %s2279_s16 = smov (!%p282_p6, %s1744_s16), 1 }
  0x10   : > { %s1427_s23 = sadd.s32 4294967295, %s277_s22  ;;  %s1430_s24 = sshll.u32 %s2279_s16, 3 }
  0x11   : > { %p279_p7 = scmp.lt.s32.totalorder %s1740_s15, %s1427_s23  ;;  %s1590_s25 = smul.u32 192, %s2279_s16 }
  0x12   : > { %s1822_s29 = scalar_lea.vmem %s2264_s1, %s1430_s24  ;;  %s1832_s10 = scalar_lea.vmem %s2266_s3, %s2279_s16 }
  0x13   : > { %s280_s26 = scalar_select %p279_p7, %s1740_s15, %s1427_s23 }
  0x14   : > { %s1827_s6 = scalar_lea.vmem %s2265_s2, %s1590_s25  ;;  %s1837_s13 = scalar_lea.vmem %s2267_s4, %s1430_s24 }
  0x15   : > { %s1428_s7 = sshll.u32 %s280_s26, 3  ;;  %s1589_s14 = smul.u32 48, %s2279_s16 }
  0x16   : > { %p284_p8 = scmp.lt.s32.totalorder %s1428_s7, 15 }
  0x18   : > { %s2281_s7 = smov (!%p284_p8, %s1428_s7), 15 }
  0x19   : > { %s1588_s23 = smul.u32 3, %s2281_s7 }
  0x1a   : > { %316 = sbr.rel (%p1433_p9) target bundleno = 33 (0x21), region = 40 }
  0x1b   : > { %s288_s27 = sadd.s32 %s1589_s14, %s1588_s23 }
  0x1c   : > { %s1429_s28 = sshll.u32 %s288_s27, 2 }
  0x1d   : > { %s1842_s26 = scalar_lea.vmem %s2263_s0, %s1429_s28 }
  0x1f   : > { %v1758_v0 = vmov 0.0  }
  0x20   : > { %317 = vst [vmem:[%s1837_s13] sm:$0xff] %v1758_v0 }
  0x21 PF: > { %p1434_p10 = scmp.ge.s32.totalorder %s1740_s15, %s277_s22 }
  0x22   : > { %s1924_s16 = sshll.u32 (!%p1434_p10), %s1740_s15, 3 }
  0x23   : > { %323 = sbr.rel (%p1434_p10) target bundleno = 1489 (0x5d1), region = 44  ;;  %s686_s22 = sadd.s32 (!%p1434_p10), 1, %s1924_s16 }
  0x24   : > { %s1201_s15 = sadd.s32 (!%p1434_p10), 6, %s1924_s16  ;;  %s789_s24 = sadd.s32 (!%p1434_p10), 2, %s1924_s16 }
  0x25   : > { %s1304_s5 = sadd.s32 (!%p1434_p10), 7, %s1924_s16  ;;  %s1098_s7 = sadd.s32 (!%p1434_p10), 5, %s1924_s16 }
  0x28   : > { %v1522_v1 = vld [vmem:[%s1827_s6 + $0xa8] sm:$0xf]  ;;  %v1586_v2 = vld [vmem:[%s1827_s6 + $0xb0] sm:$0xf0]  ;;  %v1585_v3 = vld [vmem:[%s1827_s6 + $0xac] sm:$0xf]  ;;  %v584_v51 = vstv %s1924_s16 }
  0x29   : > { %v1850_v4 = vor.u32 %v1586_v2, %v1522_v1  ;;  %v1524_v5 = vld [vmem:[%s1827_s6 + $0xb4] sm:$0xf0]  ;;  %v1510_v6 = vld [vmem:[%s1827_s6 + $0x90] sm:$0xf]  ;;  %v1583_v7 = vld [vmem:[%s1827_s6 + $0x98] sm:$0xf0]  ;;  %v687_v59 = vstv %s686_s22 }
  0x2a   : > { %v1855_v8 = vor.u32 %v1585_v3, %v1524_v5  ;;  %v1582_v9 = vld [vmem:[%s1827_s6 + $0x94] sm:$0xf]  ;;  %v1512_v10 = vld [vmem:[%s1827_s6 + $0x9c] sm:$0xf0]  ;;  %v1860_v11 = vor.u32 %v1583_v7, %v1510_v6  ;;  %v1498_v13 = vld [vmem:[%s1827_s6 + $0x78] sm:$0xf] }
  0x2b   : > { %494 = vmatpush.bf16.msra.mxu0 %v1850_v4  ;;  %599 = vmatpush.bf16.msra.mxu3 %v1850_v4  ;;  %v1864_v12 = vor.u32 %v1582_v9, %v1512_v10  ;;  %v1580_v14 = vld [vmem:[%s1827_s6 + $0x80] sm:$0xf0]  ;;  %v1579_v15 = vld [vmem:[%s1827_s6 + $0x7c] sm:$0xf]  ;;  %v1500_v16 = vld [vmem:[%s1827_s6 + $0x84] sm:$0xf0] }
  0x2c   : > { %507 = vmatpush.bf16.msra.mxu1 %v1855_v8  ;;  %v1530_v17 = vld [vmem:[%s1827_s6 + $0xb0] sm:$0xf]  ;;  %v1587_v18 = vld [vmem:[%s1827_s6 + $0xb8] sm:$0xf0]  ;;  %v1875_v20 = vor.u32 %v1580_v14, %v1498_v13  ;;  %v1518_v21 = vld [vmem:[%s1827_s6 + $0x98] sm:$0xf]  ;;  %v1881_v23 = vor.u32 %v1579_v15, %v1500_v16 }
  0x2d   : > { %v1872_v19 = vor.u32 %v1587_v18, %v1530_v17  ;;  %v1584_v22 = vld [vmem:[%s1827_s6 + $0xa0] sm:$0xf0]  ;;  %v1486_v24 = vld [vmem:[%s1827_s6 + $0x60] sm:$0xf]  ;;  %v1577_v25 = vld [vmem:[%s1827_s6 + $0x68] sm:$0xf0]  ;;  %v1202_v17 = vstv %s1201_s15 }
  0x2e   : > { %v1576_v26 = vld [vmem:[%s1827_s6 + $0x64] sm:$0xf]  ;;  %v1887_v27 = vor.u32 %v1584_v22, %v1518_v21  ;;  %v1488_v28 = vld [vmem:[%s1827_s6 + $0x6c] sm:$0xf0]  ;;  %v1506_v29 = vld [vmem:[%s1827_s6 + $0x80] sm:$0xf]  ;;  %v1893_v31 = vor.u32 %v1577_v25, %v1486_v24 }
  0x2f   : > { %495 = vmatpush.bf16.msra.mxu0 %v1860_v11  ;;  %600 = vmatpush.bf16.msra.mxu3 %v1860_v11  ;;  %v1581_v30 = vld [vmem:[%s1827_s6 + $0x88] sm:$0xf0]  ;;  %v1897_v32 = vor.u32 %v1576_v26, %v1488_v28  ;;  %v1474_v33 = vld [vmem:[%s1827_s6 + $0x48] sm:$0xf]  ;;  %v1574_v34 = vld [vmem:[%s1827_s6 + $0x50] sm:$0xf0] }
  0x30   : > { %508 = vmatpush.bf16.msra.mxu1 %v1864_v12  ;;  %520 = vmatpush.bf16.msra.mxu2 %v1872_v19  ;;  %v1573_v35 = vld [vmem:[%s1827_s6 + $0x4c] sm:$0xf]  ;;  %v1903_v36 = vor.u32 %v1581_v30, %v1506_v29  ;;  %v1476_v37 = vld [vmem:[%s1827_s6 + $0x54] sm:$0xf0]  ;;  %v1494_v38 = vld [vmem:[%s1827_s6 + $0x68] sm:$0xf]  ;;  %v1909_v40 = vor.u32 %v1574_v34, %v1474_v33 }
  0x31   : > { %v1578_v39 = vld [vmem:[%s1827_s6 + $0x70] sm:$0xf0]  ;;  %v1462_v41 = vld [vmem:[%s1827_s6 + $0x30] sm:$0xf]  ;;  %v1571_v42 = vld [vmem:[%s1827_s6 + $0x38] sm:$0xf0]  ;;  %v1916_v45 = vor.u32 %v1573_v35, %v1476_v37 }
  0x32   : > { %v1570_v43 = vld [vmem:[%s1827_s6 + $0x34] sm:$0xf]  ;;  %v1759_v44 = vmov 0   ;;  %v1464_v46 = vld [vmem:[%s1827_s6 + $0x3c] sm:$0xf0]  ;;  %v1920_v47 = vor.u32 %v1578_v39, %v1494_v38  ;;  %v1937_v52 = vor.u32 %v1571_v42, %v1462_v41 }
  0x33   : > { %496 = vmatpush.bf16.msra.mxu0 %v1875_v20  ;;  %601 = vmatpush.bf16.msra.mxu3 %v1875_v20  ;;  %v1482_v48 = vld [vmem:[%s1827_s6 + $0x50] sm:$0xf]  ;;  %v1927_v49 = vld [vmem:[%s1822_s29] sm:$0xff]  ;;  %v1575_v50 = vld [vmem:[%s1827_s6 + $0x58] sm:$0xf0]  ;;  %v1941_v54 = vor.u32 %v1570_v43, %v1464_v46  ;;  %s892_s29 = sadd.s32 3, %s1924_s16 }
  0x34   : > { %509 = vmatpush.bf16.msra.mxu1 %v1881_v23  ;;  %521 = vmatpush.bf16.msra.mxu2 %v1887_v27  ;;  %vm585_vm0 = vcmp.lt.s32.totalorder %v584_v51, %v1927_v49  ;;  %v1450_v55 = vld [vmem:[%s1827_s6 + $0x18] sm:$0xf]  ;;  %v1568_v56 = vld [vmem:[%s1827_s6 + $0x20] sm:$0xf0]  ;;  %v1567_v57 = vld [vmem:[%s1827_s6 + $0x1c] sm:$0xf]  ;;  %v1947_v58 = vor.u32 %v1575_v50, %v1482_v48  ;;  %vm688_vm1 = vcmp.lt.s32.totalorder %v687_v59, %v1927_v49 }
  0x35   : > { %1633 = vset.pattern.permute.xlu0 %v1759_v44  ;;  %1634 = vset.pattern.permute.xlu1 %v1759_v44  ;;  %v586_v53 = vsel %vm585_vm0, 1, %v1759_v44  ;;  %v1452_v60 = vld [vmem:[%s1827_s6 + $0x24] sm:$0xf0]  ;;  %v1470_v61 = vld [vmem:[%s1827_s6 + $0x38] sm:$0xf]  ;;  %v1954_v63 = vor.u32 %v1568_v56, %v1450_v55  ;;  %v689_v10 = vsel %vm688_vm1, 1, %v1759_v44  ;;  %vm1203_vm2 = vcmp.lt.s32.totalorder %v1202_v17, %v1927_v49 }
  0x36   : > { %1635 = vset.pattern.permute.xlu2 %v1759_v44  ;;  %v1572_v62 = vld [vmem:[%s1827_s6 + $0x40] sm:$0xf0]  ;;  %588 = vperm.xlu0 %1633, %v586_v53   ;;  %v1438_v0 = vld [vmem:[%s1827_s6] sm:$0xf]  ;;  %v1959_v1 = vor.u32 %v1567_v57, %v1452_v60  ;;  %v1565_v2 = vld [vmem:[%s1827_s6 + $0x8] sm:$0xf0] }
  0x37   : > { %497 = vmatpush.bf16.msra.mxu0 %v1893_v31  ;;  %602 = vmatpush.bf16.msra.mxu3 %v1893_v31  ;;  %v1564_v3 = vld [vmem:[%s1827_s6 + $0x4] sm:$0xf]  ;;  %v1440_v5 = vld [vmem:[%s1827_s6 + $0xc] sm:$0xf0]  ;;  %v1965_v6 = vor.u32 %v1572_v62, %v1470_v61  ;;  %v1458_v7 = vld [vmem:[%s1827_s6 + $0x20] sm:$0xf]  ;;  %v1973_v13 = vor.u32 %v1565_v2, %v1438_v0 }
  0x38   : > { %510 = vmatpush.bf16.msra.mxu1 %v1897_v32  ;;  %522 = vmatpush.bf16.msra.mxu2 %v1903_v36  ;;  %v1569_v9 = vld [vmem:[%s1827_s6 + $0x28] sm:$0xf0]  ;;  %v1976_v14 = vld [vmem:[%s1837_s13] sm:$0xff]  ;;  %v1979_v15 = vor.u32 %v1564_v3, %v1440_v5  ;;  %v1446_v18 = vld [vmem:[%s1827_s6 + $0x8] sm:$0xf]  ;;  %v1204_v25 = vsel %vm1203_vm2, 1, %v1759_v44 }
  0x39   : > { %v1982_v16 = vor.u32 %v1569_v9, %v1458_v7  ;;  %v1566_v21 = vld [vmem:[%s1827_s6 + $0x10] sm:$0xf0]  ;;  %v365_v22 = vpack.c.bf16 %v1976_v14, %v1976_v14  ;;  %v360_v26 = vld [vmem:[%s1842_s26] sm:$0xff]  ;;  %v361_v5 = vld [vmem:[%s1842_s26 + $0x8] sm:$0xf]  ;;  %s995_s6 = sadd.s32 4, %s1924_s16 }
  0x3a   : > { %v1993_v24 = vor.u32 %v1566_v21, %v1446_v18  ;;  %v362_v28 = vunpack.c.l.bf16 %v360_v26  ;;  %v363_v29 = vunpack.c.h.bf16 %v360_v26  ;;  %v2056_v60 = vld [vmem:[%s1832_s10] ss:$0 sm:$0xff]  ;;  %v364_v17 = vunpack.c.l.bf16 %v361_v5 }
  0x3b   : > { %498 = vmatpush.bf16.msra.mxu0 %v1909_v40  ;;  %603 = vmatpush.bf16.msra.mxu3 %v1909_v40 }
  0x3c   : > { %511 = vmatpush.bf16.msra.mxu1 %v1916_v45  ;;  %523 = vmatpush.bf16.msra.mxu2 %v1920_v47 }
  0x3e   : > { %691 = vperm.xlu0 %1633, %v689_v10  }
  0x3f   : > { %499 = vmatpush.bf16.msra.mxu0 %v1937_v52  ;;  %604 = vmatpush.bf16.msra.mxu3 %v1937_v52 }
  0x40   : > { %512 = vmatpush.bf16.msra.mxu1 %v1941_v54  ;;  %524 = vmatpush.bf16.msra.mxu2 %v1947_v58 }
  0x43   : > { %500 = vmatpush.bf16.msra.mxu0 %v1954_v63  ;;  %605 = vmatpush.bf16.msra.mxu3 %v1954_v63 }
  0x44   : > { %513 = vmatpush.bf16.msra.mxu1 %v1959_v1  ;;  %525 = vmatpush.bf16.msra.mxu2 %v1965_v6 }
  0x46   : > { %1206 = vperm.xlu0 %1633, %v1204_v25  }
  0x47   : > { %501 = vmatpush.bf16.msra.mxu0 %v1973_v13  ;;  %606 = vmatpush.bf16.msra.mxu3 %v1973_v13 }
  0x48   : > { %514 = vmatpush.bf16.msra.mxu1 %v1979_v15  ;;  %526 = vmatpush.bf16.msra.mxu2 %v1982_v16 }
  0x4a   : > { %502 = vmatmul.bf16.vlgmr.msra.gmra.mxu0 %v365_v22 }
  0x4b   : > { %612 = vmatpush.bf16.msrb.mxu0 %v1855_v8  ;;  %515 = vmatmul.bf16.vlgmr.msra.gmra.mxu1 %v365_v22 }
  0x4c   : > { %625 = vmatpush.bf16.msrb.mxu1 %v1872_v19  ;;  %715 = vmatpush.bf16.msrb.mxu3 %v1855_v8 }
  0x4d   : > { %527 = vmatpush.bf16.msra.mxu2 %v1993_v24 }
  0x4f   : > { %613 = vmatpush.bf16.msrb.mxu0 %v1864_v12 }
  0x50   : > { %626 = vmatpush.bf16.msrb.mxu1 %v1887_v27  ;;  %528 = vmatmul.bf16.vlgmr.msra.gmra.mxu2 %v365_v22 }
  0x51   : > { %702 = vmatpush.bf16.msrb.mxu2 %v1850_v4  ;;  %716 = vmatpush.bf16.msrb.mxu3 %v1864_v12 }
  0x53   : > { %614 = vmatpush.bf16.msrb.mxu0 %v1881_v23 }
  0x54   : > { %627 = vmatpush.bf16.msrb.mxu1 %v1903_v36 }
  0x55   : > { %703 = vmatpush.bf16.msrb.mxu2 %v1860_v11  ;;  %717 = vmatpush.bf16.msrb.mxu3 %v1881_v23 }
  0x57   : > { %615 = vmatpush.bf16.msrb.mxu0 %v1897_v32 }
  0x58   : > { %628 = vmatpush.bf16.msrb.mxu1 %v1920_v47 }
  0x59   : > { %704 = vmatpush.bf16.msrb.mxu2 %v1875_v20  ;;  %718 = vmatpush.bf16.msrb.mxu3 %v1897_v32 }
  0x5b   : > { %616 = vmatpush.bf16.msrb.mxu0 %v1916_v45 }
  0x5c   : > { %629 = vmatpush.bf16.msrb.mxu1 %v1947_v58 }
  0x5d   : > { %705 = vmatpush.bf16.msrb.mxu2 %v1893_v31  ;;  %719 = vmatpush.bf16.msrb.mxu3 %v1916_v45 }
  0x5f   : > { %617 = vmatpush.bf16.msrb.mxu0 %v1941_v54 }
  0x60   : > { %630 = vmatpush.bf16.msrb.mxu1 %v1965_v6 }
  0x61   : > { %706 = vmatpush.bf16.msrb.mxu2 %v1909_v40  ;;  %720 = vmatpush.bf16.msrb.mxu3 %v1941_v54 }
  0x63   : > { %618 = vmatpush.bf16.msrb.mxu0 %v1959_v1 }
  0x64   : > { %631 = vmatpush.bf16.msrb.mxu1 %v1982_v16 }
  0x65   : > { %707 = vmatpush.bf16.msrb.mxu2 %v1937_v52  ;;  %721 = vmatpush.bf16.msrb.mxu3 %v1959_v1 }
  0x67   : > { %619 = vmatpush.bf16.msrb.mxu0 %v1979_v15 }
  0x68   : > { %632 = vmatpush.bf16.msrb.mxu1 %v1993_v24 }
  0x69   : > { %708 = vmatpush.bf16.msrb.mxu2 %v1954_v63  ;;  %722 = vmatpush.bf16.msrb.mxu3 %v1979_v15 }
  0x6b   : > { %728 = vmatpush.bf16.msra.mxu0 %v1872_v19 }
  0x6c   : > { %805 = vmatpush.bf16.msra.mxu1 %v1850_v4 }
  0x6d   : > { %709 = vmatpush.bf16.msrb.mxu2 %v1973_v13 }
  0x6f   : > { %729 = vmatpush.bf16.msra.mxu0 %v1887_v27 }
  0x70   : > { %806 = vmatpush.bf16.msra.mxu1 %v1860_v11 }
  0x71   : > { %818 = vmatpush.bf16.msra.mxu2 %v1855_v8 }
  0x73   : > { %730 = vmatpush.bf16.msra.mxu0 %v1903_v36 }
  0x74   : > { %807 = vmatpush.bf16.msra.mxu1 %v1875_v20 }
  0x75   : > { %819 = vmatpush.bf16.msra.mxu2 %v1864_v12 }
  0x77   : > { %731 = vmatpush.bf16.msra.mxu0 %v1920_v47 }
  0x78   : > { %808 = vmatpush.bf16.msra.mxu1 %v1893_v31 }
  0x79   : > { %820 = vmatpush.bf16.msra.mxu2 %v1881_v23 }
  0x7b   : > { %732 = vmatpush.bf16.msra.mxu0 %v1947_v58 }
  0x7c   : > { %809 = vmatpush.bf16.msra.mxu1 %v1909_v40 }
  0x7d   : > { %821 = vmatpush.bf16.msra.mxu2 %v1897_v32 }
  0x7f   : > { %733 = vmatpush.bf16.msra.mxu0 %v1965_v6 }
  0x80   : > { %810 = vmatpush.bf16.msra.mxu1 %v1937_v52 }
  0x81   : > { %822 = vmatpush.bf16.msra.mxu2 %v1916_v45 }
  0x83   : > { %734 = vmatpush.bf16.msra.mxu0 %v1982_v16 }
  0x84   : > { %811 = vmatpush.bf16.msra.mxu1 %v1954_v63 }
  0x85   : > { %823 = vmatpush.bf16.msra.mxu2 %v1941_v54 }
  0x87   : > { %735 = vmatpush.bf16.msra.mxu0 %v1993_v24 }
  0x88   : > { %812 = vmatpush.bf16.msra.mxu1 %v1973_v13 }
  0x89   : > { %824 = vmatpush.bf16.msra.mxu2 %v1959_v1 }
  0x8d   : > { %825 = vmatpush.bf16.msra.mxu2 %v1979_v15 }
  0xc7   : > { %v503_v30 = vpop.f32.mrf.mxu0 }
  0xc8   : > { %v533_v33 = vadd.f32 %v503_v30, %v362_v28  ;;  %v516_v34 = vpop.f32.mrf.mxu1 }
  0xc9   : > { %v553_v35 = vadd.f32 %v516_v34, %v363_v29 }
  0xca   : > { %v1532_v37 = vmul.f32 -1.442695, %v533_v33 }
  0xcb   : > { %v1533_v38 = vmul.f32 -1.442695, %v553_v35 }
  0xcc   : > { %1637 = vpow2.f32 %v1532_v37 }
  0xcd   : > { %1639 = vpow2.f32 %v1533_v38 }
  0xcf   : > { %v505_v39 = vpop.f32.mrf.mxu0 }
  0xd0   : > { %v518_v41 = vpop.f32.mrf.mxu1 }
  0xd1   : > { %v589_v41 = vpop.permute.xlu0 %588 }
  0xd2   : > { %v1638_v42 = vpop.eup %1637  ;;  %vm590_vm11 = vcmp.eq.s32.totalorder %v589_v41, 1 }
  0xd3   : > { %v529_v43 = vpop.f32.mrf.mxu2  ;;  %v1640_v46 = vpop.eup %1639  ;;  %v537_v48 = vadd.f32 1.0, %v1638_v42 }
  0xd4   : > { %v557_v50 = vadd.f32 1.0, %v1640_v46  ;;  %v576_v9 = vadd.f32 %v2056_v60, %v529_v43 }
  0xd5   : > { %1641 = vrcp.f32 %v537_v48  ;;  %v549_v62 = vand.u32 2147483648, %v537_v48  ;;  %v547_v2 = vand.u32 2147483647, %v537_v48  ;;  %vm543_vm4 = vweird.f32 %v537_v48 }
  0xd6   : > { %1643 = vrcp.f32 %v557_v50  ;;  %vm563_vm7 = vweird.f32 %v557_v50  ;;  %v569_v26 = vand.u32 2147483648, %v557_v50  ;;  %v567_v28 = vand.u32 2147483647, %v557_v50 }
  0xd7   : > { %v550_v10 = vor.u32 1.1754944e-38, %v549_v62  ;;  %vm548_vm6 = vcmp.eq.f32.partialorder %v547_v2, 8.507059e+37 }
  0xd8   : > { %v570_v33 = vor.u32 1.1754944e-38, %v569_v26  ;;  %vm568_vm10 = vcmp.eq.f32.partialorder %v567_v28, 8.507059e+37 }
  0xdb   : > { %v531_v51 = vpop.f32.mrf.mxu2  ;;  %v1642_v53 = vpop.eup %1641 }
  0xdc   : > { %v1644_v55 = vpop.eup %1643  ;;  %v539_v56 = vmul.f32 %v1642_v53, %v537_v48  ;;  %vm544_vm3 = vweird.f32 %v1642_v53 }
  0xdd   : > { %v559_v57 = vmul.f32 %v1644_v55, %v557_v50  ;;  %vm545_vm5 = vmor %vm543_vm4, %vm544_vm3  ;;  %vm564_vm8 = vweird.f32 %v1644_v55 }
  0xde   : > { %v540_v59 = vsub.f32 1.0, %v539_v56  ;;  %vm565_vm9 = vmor %vm563_vm7, %vm564_vm8 }
  0xdf   : > { %v560_v61 = vsub.f32 1.0, %v559_v57 }
  0xe0   : > { %v541_v0 = vmul.f32 %v1642_v53, %v540_v59 }
  0xe1   : > { %v561_v3 = vmul.f32 %v1644_v55, %v560_v61 }
  0xe2   : > { %v542_v7 = vadd.f32 %v1642_v53, %v541_v0 }
  0xe3   : > { %v562_v22 = vadd.f32 %v1644_v55, %v561_v3 }
  0xe4   : > { %v546_v18 = vsel %vm545_vm5, %v1642_v53, %v542_v7 }
  0xe5   : > { %v551_v21 = vsel %vm548_vm6, %v550_v10, %v546_v18  ;;  %v566_v30 = vsel %vm565_vm9, %v1644_v55, %v562_v22  ;;  %v790_v18 = vstv %s789_s24 }
  0xe6   : > { %v577_v25 = vmul.f32 %v576_v9, %v551_v21  ;;  %v571_v34 = vsel %vm568_vm10, %v570_v33, %v566_v30  ;;  %vm791_vm12 = vcmp.lt.s32.totalorder %v790_v18, %v1927_v49 }
  0xe7   : > { %v580_v35 = vsub.f32 1.0, %v571_v34  ;;  %v582_v39 = vmul.f32 %v571_v34, %v1976_v14  ;;  %v792_v22 = vsel %vm791_vm12, 1, %v1759_v44 }
  0xe8   : > { %v578_v29 = vadd.f32 %v577_v25, %v364_v17  ;;  %v893_v25 = vstv %s892_s29  ;;  %794 = vperm.xlu1 %1634, %v792_v22  }
  0xe9   : > { %vm894_vm13 = vcmp.lt.s32.totalorder %v893_v25, %v1927_v49 }
  0xea   : > { %1645 = vtanh.f32 %v578_v29 }
  0xf0   : > { %v1646_v37 = vpop.eup %1645 }
  0xf1   : > { %v581_v38 = vmul.f32 %v1646_v37, %v580_v35  ;;  %v1535_v37 = vld [vmem:[%s1842_s26 + $0x14] sm:$0xf] }
  0xf3   : > { %v583_v42 = vadd.f32 %v582_v39, %v581_v38  ;;  %v895_v38 = vsel %vm894_vm13, 1, %v1759_v44 }
  0xf4   : > { %897 = vperm.xlu1 %1634, %v895_v38  }
  0xf5   : > { %v2062_v43 = vsel %vm590_vm11, %v583_v42, %v1976_v14  ;;  %v1534_v14 = vld [vmem:[%s1842_s26 + $0xc] sm:$0xff]  ;;  %v1305_v42 = vstv %s1304_s5 }
  0xf6   : > { %v598_v46 = vpack.c.bf16 %v2062_v43, %v2062_v43  ;;  %v596_v48 = vunpack.c.h.bf16 %v1534_v14  ;;  %v595_v56 = vunpack.c.l.bf16 %v1534_v14  ;;  %vm1306_vm3 = vcmp.lt.s32.totalorder %v1305_v42, %v1927_v49 }
  0xf8   : > { %607 = vmatmul.bf16.vlgmr.msra.gmra.mxu3 %v598_v46  ;;  %620 = vmatmul.bf16.vlgmr.msrb.gmra.mxu0 %v598_v46 }
  0xf9   : > { %633 = vmatmul.bf16.vlgmr.msrb.gmra.mxu1 %v598_v46  ;;  %831 = vmatpush.bf16.msra.mxu3 %v1872_v19 }
  0xfa   : > { %908 = vmatpush.bf16.msrb.mxu0 %v1850_v4  ;;  %921 = vmatpush.bf16.msrb.mxu1 %v1855_v8 }
  0xfd   : > { %832 = vmatpush.bf16.msra.mxu3 %v1887_v27 }
  0xfe   : > { %909 = vmatpush.bf16.msrb.mxu0 %v1860_v11  ;;  %922 = vmatpush.bf16.msrb.mxu1 %v1864_v12 }
 0x101   : > { %833 = vmatpush.bf16.msra.mxu3 %v1903_v36 }
 0x102   : > { %910 = vmatpush.bf16.msrb.mxu0 %v1875_v20  ;;  %923 = vmatpush.bf16.msrb.mxu1 %v1881_v23 }
 0x105   : > { %834 = vmatpush.bf16.msra.mxu3 %v1920_v47 }
 0x106   : > { %911 = vmatpush.bf16.msrb.mxu0 %v1893_v31  ;;  %924 = vmatpush.bf16.msrb.mxu1 %v1897_v32 }
 0x109   : > { %835 = vmatpush.bf16.msra.mxu3 %v1947_v58 }
 0x10a   : > { %912 = vmatpush.bf16.msrb.mxu0 %v1909_v40  ;;  %925 = vmatpush.bf16.msrb.mxu1 %v1916_v45 }
 0x10d   : > { %836 = vmatpush.bf16.msra.mxu3 %v1965_v6 }
 0x10e   : > { %913 = vmatpush.bf16.msrb.mxu0 %v1937_v52  ;;  %926 = vmatpush.bf16.msrb.mxu1 %v1941_v54 }
 0x111   : > { %837 = vmatpush.bf16.msra.mxu3 %v1982_v16 }
 0x112   : > { %914 = vmatpush.bf16.msrb.mxu0 %v1954_v63  ;;  %927 = vmatpush.bf16.msrb.mxu1 %v1959_v1 }
 0x115   : > { %838 = vmatpush.bf16.msra.mxu3 %v1993_v24 }
 0x116   : > { %915 = vmatpush.bf16.msrb.mxu0 %v1973_v13  ;;  %928 = vmatpush.bf16.msrb.mxu1 %v1979_v15 }
 0x175   : > { %v621_v50 = vpop.f32.mrf.mxu0 }
 0x176   : > { %v658_v51 = vadd.f32 %v621_v50, %v596_v48  ;;  %v634_v53 = vpop.f32.mrf.mxu1  ;;  %v597_v48 = vunpack.c.l.bf16 %v1535_v37 }
 0x177   : > { %v678_v46 = vadd.f32 %v2056_v60, %v634_v53 }
 0x178   : > { %v1537_v55 = vmul.f32 -1.442695, %v658_v51 }
 0x17a   : > { %1647 = vpow2.f32 %v1537_v55 }
 0x17b   : > { %v608_v57 = vpop.f32.mrf.mxu3 }
 0x17c   : > { %v638_v59 = vadd.f32 %v608_v57, %v595_v56 }
 0x17d   : > { %v623_v61 = vpop.f32.mrf.mxu0 }
 0x17e   : > { %v1536_v62 = vmul.f32 -1.442695, %v638_v59  ;;  %v636_v0 = vpop.f32.mrf.mxu1 }
 0x180   : > { %v1648_v2 = vpop.eup %1647  ;;  %1649 = vpow2.f32 %v1536_v62  ;;  %v1307_v62 = vsel %vm1306_vm3, 1, %v1759_v44 }
 0x181   : > { %v662_v3 = vadd.f32 1.0, %v1648_v2  ;;  %1309 = vperm.xlu1 %1634, %v1307_v62  }
 0x183   : > { %v610_v5 = vpop.f32.mrf.mxu3  ;;  %1651 = vrcp.f32 %v662_v3  ;;  %v674_v55 = vand.u32 2147483648, %v662_v3  ;;  %vm668_vm4 = vweird.f32 %v662_v3  ;;  %v672_v57 = vand.u32 2147483647, %v662_v3 }
 0x185   : > { %v675_v0 = vor.u32 1.1754944e-38, %v674_v55  ;;  %vm673_vm6 = vcmp.eq.f32.partialorder %v672_v57, 8.507059e+37 }
 0x186   : > { %v1650_v7 = vpop.eup %1649 }
 0x187   : > { %v642_v9 = vadd.f32 1.0, %v1650_v7 }
 0x189   : > { %1653 = vrcp.f32 %v642_v9  ;;  %v1652_v10 = vpop.eup %1651  ;;  %v654_v30 = vand.u32 2147483648, %v642_v9  ;;  %v652_v34 = vand.u32 2147483647, %v642_v9  ;;  %vm648_vm15 = vweird.f32 %v642_v9 }
 0x18a   : > { %v664_v17 = vmul.f32 %v1652_v10, %v662_v3  ;;  %vm669_vm2 = vweird.f32 %v1652_v10 }
 0x18b   : > { %v655_v41 = vor.u32 1.1754944e-38, %v654_v30  ;;  %vm653_vm1 = vcmp.eq.f32.partialorder %v652_v34, 8.507059e+37  ;;  %vm670_vm5 = vmor %vm668_vm4, %vm669_vm2 }
 0x18c   : > { %v665_v28 = vsub.f32 1.0, %v664_v17  ;;  %v692_v17 = vpop.permute.xlu0 %691 }
 0x18d   : > { %vm693_vm7 = vcmp.eq.s32.totalorder %v692_v17, 1 }
 0x18e   : > { %v666_v35 = vmul.f32 %v1652_v10, %v665_v28 }
 0x18f   : > { %v1654_v21 = vpop.eup %1653 }
 0x190   : > { %v644_v26 = vmul.f32 %v1654_v21, %v642_v9  ;;  %vm649_vm14 = vweird.f32 %v1654_v21  ;;  %v667_v50 = vadd.f32 %v1652_v10, %v666_v35 }
 0x191   : > { %vm650_vm0 = vmor %vm648_vm15, %vm649_vm14 }
 0x192   : > { %v645_v29 = vsub.f32 1.0, %v644_v26  ;;  %v671_v61 = vsel %vm670_vm5, %v1652_v10, %v667_v50 }
 0x193   : > { %v676_v53 = vsel %vm673_vm6, %v675_v0, %v671_v61  ;;  %v1539_v0 = vld [vmem:[%s1842_s26 + $0x20] sm:$0xf] }
 0x194   : > { %v646_v33 = vmul.f32 %v1654_v21, %v645_v29  ;;  %v682_v2 = vsub.f32 1.0, %v676_v53  ;;  %v684_v9 = vmul.f32 %v676_v53, %v2062_v43 }
 0x196   : > { %v647_v39 = vadd.f32 %v1654_v21, %v646_v33 }
 0x198   : > { %v651_v14 = vsel %vm650_vm0, %v1654_v21, %v647_v39 }
 0x199   : > { %v656_v51 = vsel %vm653_vm1, %v655_v41, %v651_v14 }
 0x19a   : > { %v679_v56 = vmul.f32 %v678_v46, %v656_v51 }
 0x19c   : > { %v680_v59 = vadd.f32 %v679_v56, %v597_v48 }
 0x19e   : > { %1655 = vtanh.f32 %v680_v59 }
 0x1a4   : > { %v1656_v5 = vpop.eup %1655 }
 0x1a5   : > { %v683_v7 = vmul.f32 %v1656_v5, %v682_v2 }
 0x1a7   : > { %v685_v18 = vadd.f32 %v684_v9, %v683_v7  ;;  %v700_v9 = vunpack.c.l.bf16 %v1539_v0 }
 0x1a9   : > { %v2104_v3 = vsel %vm693_vm7, %v685_v18, %v2062_v43  ;;  %v1538_v43 = vld [vmem:[%s1842_s26 + $0x18] sm:$0xff] }
 0x1aa   : > { %v701_v10 = vpack.c.bf16 %v2104_v3, %v2104_v3  ;;  %v698_v22 = vunpack.c.l.bf16 %v1538_v43  ;;  %v699_v25 = vunpack.c.h.bf16 %v1538_v43 }
 0x1ac   : > { %710 = vmatmul.bf16.vlgmr.msrb.gmra.mxu2 %v701_v10  ;;  %723 = vmatmul.bf16.vlgmr.msrb.gmra.mxu3 %v701_v10 }
 0x1ad   : > { %736 = vmatmul.bf16.vlgmr.msra.gmra.mxu0 %v701_v10  ;;  %934 = vmatpush.bf16.msrb.mxu2 %v1872_v19 }
 0x1ae   : > { %1011 = vmatpush.bf16.msrb.mxu3 %v1850_v4  ;;  %1024 = vmatpush.bf16.msra.mxu0 %v1855_v8 }
 0x1b1   : > { %935 = vmatpush.bf16.msrb.mxu2 %v1887_v27 }
 0x1b2   : > { %1012 = vmatpush.bf16.msrb.mxu3 %v1860_v11  ;;  %1025 = vmatpush.bf16.msra.mxu0 %v1864_v12 }
 0x1b5   : > { %936 = vmatpush.bf16.msrb.mxu2 %v1903_v36 }
 0x1b6   : > { %1013 = vmatpush.bf16.msrb.mxu3 %v1875_v20  ;;  %1026 = vmatpush.bf16.msra.mxu0 %v1881_v23 }
 0x1b9   : > { %937 = vmatpush.bf16.msrb.mxu2 %v1920_v47 }
 0x1ba   : > { %1014 = vmatpush.bf16.msrb.mxu3 %v1893_v31  ;;  %1027 = vmatpush.bf16.msra.mxu0 %v1897_v32 }
 0x1bd   : > { %938 = vmatpush.bf16.msrb.mxu2 %v1947_v58 }
 0x1be   : > { %1015 = vmatpush.bf16.msrb.mxu3 %v1909_v40  ;;  %1028 = vmatpush.bf16.msra.mxu0 %v1916_v45 }
 0x1c1   : > { %939 = vmatpush.bf16.msrb.mxu2 %v1965_v6 }
 0x1c2   : > { %1016 = vmatpush.bf16.msrb.mxu3 %v1937_v52  ;;  %1029 = vmatpush.bf16.msra.mxu0 %v1941_v54 }
 0x1c5   : > { %940 = vmatpush.bf16.msrb.mxu2 %v1982_v16 }
 0x1c6   : > { %1017 = vmatpush.bf16.msrb.mxu3 %v1954_v63  ;;  %1030 = vmatpush.bf16.msra.mxu0 %v1959_v1 }
 0x1c9   : > { %941 = vmatpush.bf16.msrb.mxu2 %v1993_v24 }
 0x1ca   : > { %1018 = vmatpush.bf16.msrb.mxu3 %v1973_v13  ;;  %1031 = vmatpush.bf16.msra.mxu0 %v1979_v15 }
 0x22a   : > { %v737_v21 = vpop.f32.mrf.mxu0 }
 0x22b   : > { %v781_v5 = vadd.f32 %v2056_v60, %v737_v21  ;;  %v795_v21 = vpop.permute.xlu1 %794 }
 0x22c   : > { %vm796_vm0 = vcmp.eq.s32.totalorder %v795_v21, 1 }
 0x22f   : > { %v711_v26 = vpop.f32.mrf.mxu2  ;;  %v724_v28 = vpop.f32.mrf.mxu3 }
 0x230   : > { %v741_v29 = vadd.f32 %v711_v26, %v698_v22  ;;  %v761_v30 = vadd.f32 %v724_v28, %v699_v25 }
 0x232   : > { %v1540_v33 = vmul.f32 -1.442695, %v741_v29  ;;  %v1541_v34 = vmul.f32 -1.442695, %v761_v30  ;;  %v739_v35 = vpop.f32.mrf.mxu0 }
 0x234   : > { %1657 = vpow2.f32 %v1540_v33 }
 0x235   : > { %1659 = vpow2.f32 %v1541_v34 }
 0x237   : > { %v713_v37 = vpop.f32.mrf.mxu2  ;;  %v726_v38 = vpop.f32.mrf.mxu3 }
 0x23a   : > { %v1658_v39 = vpop.eup %1657 }
 0x23b   : > { %v1660_v41 = vpop.eup %1659  ;;  %v745_v42 = vadd.f32 1.0, %v1658_v39 }
 0x23c   : > { %v765_v46 = vadd.f32 1.0, %v1660_v41 }
 0x23d   : > { %1661 = vrcp.f32 %v745_v42  ;;  %v757_v56 = vand.u32 2147483648, %v745_v42  ;;  %v755_v61 = vand.u32 2147483647, %v745_v42  ;;  %vm751_vm9 = vweird.f32 %v745_v42 }
 0x23e   : > { %1663 = vrcp.f32 %v765_v46  ;;  %v777_v10 = vand.u32 2147483648, %v765_v46  ;;  %vm771_vm13 = vweird.f32 %v765_v46  ;;  %v775_v22 = vand.u32 2147483647, %v765_v46 }
 0x23f   : > { %v758_v2 = vor.u32 1.1754944e-38, %v757_v56  ;;  %vm756_vm11 = vcmp.eq.f32.partialorder %v755_v61, 8.507059e+37 }
 0x240   : > { %v778_v28 = vor.u32 1.1754944e-38, %v777_v10  ;;  %vm776_vm15 = vcmp.eq.f32.partialorder %v775_v22, 8.507059e+37  ;;  %v1543_v22 = vld [vmem:[%s1842_s26 + $0x2c] sm:$0xf] }
 0x241   : > { %v803_v21 = vunpack.c.l.bf16 %v1543_v22 }
 0x243   : > { %v1662_v14 = vpop.eup %1661 }
 0x244   : > { %v1664_v48 = vpop.eup %1663  ;;  %v747_v50 = vmul.f32 %v1662_v14, %v745_v42  ;;  %vm752_vm8 = vweird.f32 %v1662_v14 }
 0x245   : > { %v767_v51 = vmul.f32 %v1664_v48, %v765_v46  ;;  %vm753_vm10 = vmor %vm751_vm9, %vm752_vm8  ;;  %vm772_vm12 = vweird.f32 %v1664_v48 }
 0x246   : > { %v748_v55 = vsub.f32 1.0, %v747_v50  ;;  %vm773_vm14 = vmor %vm771_vm13, %vm772_vm12 }
 0x247   : > { %v768_v57 = vsub.f32 1.0, %v767_v51 }
 0x248   : > { %v749_v59 = vmul.f32 %v1662_v14, %v748_v55 }
 0x249   : > { %v769_v62 = vmul.f32 %v1664_v48, %v768_v57 }
 0x24a   : > { %v750_v53 = vadd.f32 %v1662_v14, %v749_v59 }
 0x24b   : > { %v770_v18 = vadd.f32 %v1664_v48, %v769_v62 }
 0x24c   : > { %v754_v7 = vsel %vm753_vm10, %v1662_v14, %v750_v53 }
 0x24d   : > { %v759_v17 = vsel %vm756_vm11, %v758_v2, %v754_v7  ;;  %v774_v26 = vsel %vm773_vm14, %v1664_v48, %v770_v18  ;;  %v1099_v18 = vstv %s1098_s7 }
 0x24e   : > { %v782_v43 = vmul.f32 %v781_v5, %v759_v17  ;;  %v779_v29 = vsel %vm776_vm15, %v778_v28, %v774_v26  ;;  %v996_v5 = vstv %s995_s6  ;;  %vm1100_vm2 = vcmp.lt.s32.totalorder %v1099_v18, %v1927_v49 }
 0x24f   : > { %v785_v30 = vsub.f32 1.0, %v779_v29  ;;  %v787_v35 = vmul.f32 %v779_v29, %v2104_v3  ;;  %vm997_vm1 = vcmp.lt.s32.totalorder %v996_v5, %v1927_v49 }
 0x250   : > { %v783_v25 = vadd.f32 %v782_v43, %v700_v9  ;;  %v998_v17 = vsel %vm997_vm1, 1, %v1759_v44 }
 0x251   : > { %1000 = vperm.xlu2 %1635, %v998_v17  }
 0x252   : > { %1665 = vtanh.f32 %v783_v25 }
 0x258   : > { %v1666_v33 = vpop.eup %1665 }
 0x259   : > { %v786_v34 = vmul.f32 %v1666_v33, %v785_v30  ;;  %v1101_v33 = vsel %vm1100_vm2, 1, %v1759_v44 }
 0x25a   : > { %1103 = vperm.xlu2 %1635, %v1101_v33  }
 0x25b   : > { %v788_v37 = vadd.f32 %v787_v35, %v786_v34 }
 0x25d   : > { %v2137_v38 = vsel %vm796_vm0, %v788_v37, %v2104_v3  ;;  %v1542_v3 = vld [vmem:[%s1842_s26 + $0x24] sm:$0xff] }
 0x25e   : > { %v804_v39 = vpack.c.bf16 %v2137_v38, %v2137_v38  ;;  %v801_v41 = vunpack.c.l.bf16 %v1542_v3  ;;  %v802_v48 = vunpack.c.h.bf16 %v1542_v3 }
 0x260   : > { %813 = vmatmul.bf16.vlgmr.msra.gmra.mxu1 %v804_v39  ;;  %826 = vmatmul.bf16.vlgmr.msra.gmra.mxu2 %v804_v39 }
 0x261   : > { %839 = vmatmul.bf16.vlgmr.msra.gmra.mxu3 %v804_v39  ;;  %1037 = vmatpush.bf16.msra.mxu1 %v1872_v19 }
 0x262   : > { %1114 = vmatpush.bf16.msra.mxu2 %v1850_v4  ;;  %1127 = vmatpush.bf16.msra.mxu3 %v1855_v8 }
 0x265   : > { %1038 = vmatpush.bf16.msra.mxu1 %v1887_v27 }
 0x266   : > { %1115 = vmatpush.bf16.msra.mxu2 %v1860_v11  ;;  %1128 = vmatpush.bf16.msra.mxu3 %v1864_v12 }
 0x269   : > { %1039 = vmatpush.bf16.msra.mxu1 %v1903_v36 }
 0x26a   : > { %1116 = vmatpush.bf16.msra.mxu2 %v1875_v20  ;;  %1129 = vmatpush.bf16.msra.mxu3 %v1881_v23 }
 0x26d   : > { %1040 = vmatpush.bf16.msra.mxu1 %v1920_v47 }
 0x26e   : > { %1117 = vmatpush.bf16.msra.mxu2 %v1893_v31  ;;  %1130 = vmatpush.bf16.msra.mxu3 %v1897_v32 }
 0x271   : > { %1041 = vmatpush.bf16.msra.mxu1 %v1947_v58 }
 0x272   : > { %1118 = vmatpush.bf16.msra.mxu2 %v1909_v40  ;;  %1131 = vmatpush.bf16.msra.mxu3 %v1916_v45 }
 0x275   : > { %1042 = vmatpush.bf16.msra.mxu1 %v1965_v6 }
 0x276   : > { %1119 = vmatpush.bf16.msra.mxu2 %v1937_v52  ;;  %1132 = vmatpush.bf16.msra.mxu3 %v1941_v54 }
 0x279   : > { %1043 = vmatpush.bf16.msra.mxu1 %v1982_v16 }
 0x27a   : > { %1120 = vmatpush.bf16.msra.mxu2 %v1954_v63  ;;  %1133 = vmatpush.bf16.msra.mxu3 %v1959_v1 }
 0x27d   : > { %1044 = vmatpush.bf16.msra.mxu1 %v1993_v24 }
 0x27e   : > { %1121 = vmatpush.bf16.msra.mxu2 %v1973_v13  ;;  %1134 = vmatpush.bf16.msra.mxu3 %v1979_v15 }
 0x2dd   : > { %v814_v42 = vpop.f32.mrf.mxu1 }
 0x2de   : > { %v844_v46 = vadd.f32 %v814_v42, %v801_v41 }
 0x2e0   : > { %v1544_v14 = vmul.f32 -1.442695, %v844_v46 }
 0x2e2   : > { %1667 = vpow2.f32 %v1544_v14 }
 0x2e3   : > { %v827_v50 = vpop.f32.mrf.mxu2 }
 0x2e4   : > { %v864_v51 = vadd.f32 %v827_v50, %v802_v48  ;;  %v840_v55 = vpop.f32.mrf.mxu3 }
 0x2e5   : > { %v816_v56 = vpop.f32.mrf.mxu1  ;;  %v884_v39 = vadd.f32 %v2056_v60, %v840_v55 }
 0x2e6   : > { %v1545_v57 = vmul.f32 -1.442695, %v864_v51 }
 0x2e8   : > { %v1668_v59 = vpop.eup %1667  ;;  %1669 = vpow2.f32 %v1545_v57 }
 0x2e9   : > { %v848_v61 = vadd.f32 1.0, %v1668_v59 }
 0x2eb   : > { %1671 = vrcp.f32 %v848_v61  ;;  %v829_v62 = vpop.f32.mrf.mxu2  ;;  %v860_v43 = vand.u32 2147483648, %v848_v61  ;;  %v858_v26 = vand.u32 2147483647, %v848_v61  ;;  %vm854_vm4 = vweird.f32 %v848_v61 }
 0x2ec   : > { %v842_v0 = vpop.f32.mrf.mxu3 }
 0x2ed   : > { %v861_v34 = vor.u32 1.1754944e-38, %v860_v43  ;;  %vm859_vm6 = vcmp.eq.f32.partialorder %v858_v26, 8.507059e+37  ;;  %v1547_v26 = vld [vmem:[%s1842_s26 + $0x38] sm:$0xf] }
 0x2ee   : > { %v1670_v53 = vpop.eup %1669 }
 0x2ef   : > { %v868_v2 = vadd.f32 1.0, %v1670_v53 }
 0x2f1   : > { %v1672_v7 = vpop.eup %1671  ;;  %1673 = vrcp.f32 %v868_v2  ;;  %v880_v41 = vand.u32 2147483648, %v868_v2  ;;  %v878_v46 = vand.u32 2147483647, %v868_v2  ;;  %vm874_vm8 = vweird.f32 %v868_v2 }
 0x2f2   : > { %v850_v9 = vmul.f32 %v1672_v7, %v848_v61  ;;  %vm855_vm3 = vweird.f32 %v1672_v7  ;;  %v898_v61 = vpop.permute.xlu1 %897 }
 0x2f3   : > { %vm856_vm5 = vmor %vm854_vm4, %vm855_vm3  ;;  %v881_v44 = vor.u32 1.1754944e-38, %v880_v41  ;;  %vm879_vm10 = vcmp.eq.f32.partialorder %v878_v46, 8.507059e+37  ;;  %vm899_vm11 = vcmp.eq.s32.totalorder %v898_v61, 1 }
 0x2f4   : > { %v851_v10 = vsub.f32 1.0, %v850_v9 }
 0x2f6   : > { %v852_v25 = vmul.f32 %v1672_v7, %v851_v10 }
 0x2f7   : > { %v1674_v28 = vpop.eup %1673 }
 0x2f8   : > { %v870_v29 = vmul.f32 %v1674_v28, %v868_v2  ;;  %v853_v30 = vadd.f32 %v1672_v7, %v852_v25  ;;  %vm875_vm7 = vweird.f32 %v1674_v28 }
 0x2f9   : > { %vm876_vm9 = vmor %vm874_vm8, %vm875_vm7 }
 0x2fa   : > { %v871_v35 = vsub.f32 1.0, %v870_v29  ;;  %v857_v37 = vsel %vm856_vm5, %v1672_v7, %v853_v30  ;;  %v906_v30 = vunpack.c.l.bf16 %v1547_v26 }
 0x2fb   : > { %v862_v3 = vsel %vm859_vm6, %v861_v34, %v857_v37 }
 0x2fc   : > { %v872_v49 = vmul.f32 %v1674_v28, %v871_v35  ;;  %v885_v42 = vmul.f32 %v884_v39, %v862_v3 }
 0x2fe   : > { %v873_v14 = vadd.f32 %v1674_v28, %v872_v49  ;;  %v886_v48 = vadd.f32 %v885_v42, %v803_v21 }
 0x300   : > { %v877_v50 = vsel %vm876_vm9, %v1674_v28, %v873_v14  ;;  %1675 = vtanh.f32 %v886_v48 }
 0x301   : > { %v882_v51 = vsel %vm879_vm10, %v881_v44, %v877_v50  ;;  %v1001_v44 = vpop.permute.xlu2 %1000 }
 0x302   : > { %v888_v56 = vsub.f32 1.0, %v882_v51  ;;  %v890_v55 = vmul.f32 %v882_v51, %v2137_v38  ;;  %vm1002_vm4 = vcmp.eq.s32.totalorder %v1001_v44, 1 }
 0x306   : > { %v1676_v57 = vpop.eup %1675 }
 0x307   : > { %v889_v59 = vmul.f32 %v1676_v57, %v888_v56 }
 0x309   : > { %v891_v62 = vadd.f32 %v890_v55, %v889_v59  ;;  %v1550_v55 = vld [vmem:[%s1842_s26 + $0x3c] sm:$0xff] }
 0x30a   : > { %v1008_v61 = vunpack.c.h.bf16 %v1550_v55 }
 0x30b   : > { %v2176_v0 = vsel %vm899_vm11, %v891_v62, %v2137_v38 }
 0x30c   : > { %v907_v53 = vpack.c.bf16 %v2176_v0, %v2176_v0 }
 0x30e   : > { %916 = vmatmul.bf16.vlgmr.msrb.gmra.mxu0 %v907_v53  ;;  %929 = vmatmul.bf16.vlgmr.msrb.gmra.mxu1 %v907_v53 }
 0x30f   : > { %942 = vmatmul.bf16.vlgmr.msrb.gmra.mxu2 %v907_v53  ;;  %1140 = vmatpush.bf16.msrb.mxu0 %v1872_v19 }
 0x310   : > { %1217 = vmatpush.bf16.msrb.mxu1 %v1850_v4  ;;  %1230 = vmatpush.bf16.msrb.mxu2 %v1855_v8  ;;  %v1546_v4 = vld [vmem:[%s1842_s26 + $0x30] sm:$0xff] }
 0x311   : > { %v904_v8 = vunpack.c.l.bf16 %v1546_v4 }
 0x313   : > { %1141 = vmatpush.bf16.msrb.mxu0 %v1887_v27 }
 0x314   : > { %1218 = vmatpush.bf16.msrb.mxu1 %v1860_v11  ;;  %1231 = vmatpush.bf16.msrb.mxu2 %v1864_v12  ;;  %v905_v11 = vunpack.c.h.bf16 %v1546_v4  ;;  %v1007_v4 = vunpack.c.l.bf16 %v1550_v55 }
 0x317   : > { %1142 = vmatpush.bf16.msrb.mxu0 %v1903_v36 }
 0x318   : > { %1219 = vmatpush.bf16.msrb.mxu1 %v1875_v20  ;;  %1232 = vmatpush.bf16.msrb.mxu2 %v1881_v23 }
 0x31b   : > { %1143 = vmatpush.bf16.msrb.mxu0 %v1920_v47 }
 0x31c   : > { %1220 = vmatpush.bf16.msrb.mxu1 %v1893_v31  ;;  %1233 = vmatpush.bf16.msrb.mxu2 %v1897_v32 }
 0x31f   : > { %1144 = vmatpush.bf16.msrb.mxu0 %v1947_v58 }
 0x320   : > { %1221 = vmatpush.bf16.msrb.mxu1 %v1909_v40  ;;  %1234 = vmatpush.bf16.msrb.mxu2 %v1916_v45 }
 0x323   : > { %1145 = vmatpush.bf16.msrb.mxu0 %v1965_v6 }
 0x324   : > { %1222 = vmatpush.bf16.msrb.mxu1 %v1937_v52  ;;  %1235 = vmatpush.bf16.msrb.mxu2 %v1941_v54 }
 0x327   : > { %1146 = vmatpush.bf16.msrb.mxu0 %v1982_v16 }
 0x328   : > { %1223 = vmatpush.bf16.msrb.mxu1 %v1954_v63  ;;  %1236 = vmatpush.bf16.msrb.mxu2 %v1959_v1 }
 0x32b   : > { %1147 = vmatpush.bf16.msrb.mxu0 %v1993_v24 }
 0x32c   : > { %1224 = vmatpush.bf16.msrb.mxu1 %v1973_v13  ;;  %1237 = vmatpush.bf16.msrb.mxu2 %v1979_v15 }
 0x38b   : > { %v917_v12 = vpop.f32.mrf.mxu0  ;;  %v930_v20 = vpop.f32.mrf.mxu1 }
 0x38c   : > { %v947_v23 = vadd.f32 %v917_v12, %v904_v8  ;;  %v967_v31 = vadd.f32 %v930_v20, %v905_v11 }
 0x38e   : > { %v1548_v32 = vmul.f32 -1.442695, %v947_v23  ;;  %v1549_v40 = vmul.f32 -1.442695, %v967_v31 }
 0x390   : > { %1677 = vpow2.f32 %v1548_v32 }
 0x391   : > { %1679 = vpow2.f32 %v1549_v40 }
 0x392   : > { %v943_v45 = vpop.f32.mrf.mxu2 }
 0x393   : > { %v919_v52 = vpop.f32.mrf.mxu0  ;;  %v932_v54 = vpop.f32.mrf.mxu1  ;;  %v987_v21 = vadd.f32 %v2056_v60, %v943_v45 }
 0x396   : > { %v1678_v63 = vpop.eup %1677 }
 0x397   : > { %v1680_v1 = vpop.eup %1679  ;;  %v951_v38 = vadd.f32 1.0, %v1678_v63 }
 0x398   : > { %v971_v13 = vadd.f32 1.0, %v1680_v1 }
 0x399   : > { %1681 = vrcp.f32 %v951_v38  ;;  %v963_v10 = vand.u32 2147483648, %v951_v38  ;;  %v961_v22 = vand.u32 2147483647, %v951_v38  ;;  %vm957_vm13 = vweird.f32 %v951_v38 }
 0x39a   : > { %1683 = vrcp.f32 %v971_v13  ;;  %v945_v15 = vpop.f32.mrf.mxu2  ;;  %v983_v39 = vand.u32 2147483648, %v971_v13  ;;  %vm977_vm1 = vweird.f32 %v971_v13  ;;  %v981_v3 = vand.u32 2147483647, %v971_v13 }
 0x39b   : > { %v964_v29 = vor.u32 1.1754944e-38, %v963_v10  ;;  %vm962_vm15 = vcmp.eq.f32.partialorder %v961_v22, 8.507059e+37 }
 0x39c   : > { %v984_v42 = vor.u32 1.1754944e-38, %v983_v39  ;;  %vm982_vm3 = vcmp.eq.f32.partialorder %v981_v3, 8.507059e+37  ;;  %v1554_v39 = vld [vmem:[%s1842_s26 + $0x48] sm:$0xff] }
 0x39f   : > { %v1682_v2 = vpop.eup %1681 }
 0x3a0   : > { %v1684_v5 = vpop.eup %1683  ;;  %v953_v7 = vmul.f32 %v1682_v2, %v951_v38  ;;  %vm958_vm12 = vweird.f32 %v1682_v2  ;;  %v1551_v38 = vld [vmem:[%s1842_s26 + $0x44] sm:$0xf] }
 0x3a1   : > { %v973_v9 = vmul.f32 %v1684_v5, %v971_v13  ;;  %vm959_vm14 = vmor %vm957_vm13, %vm958_vm12  ;;  %vm978_vm0 = vweird.f32 %v1684_v5 }
 0x3a2   : > { %v954_v17 = vsub.f32 1.0, %v953_v7  ;;  %vm979_vm2 = vmor %vm977_vm1, %vm978_vm0 }
 0x3a3   : > { %v974_v18 = vsub.f32 1.0, %v973_v9 }
 0x3a4   : > { %v955_v43 = vmul.f32 %v1682_v2, %v954_v17 }
 0x3a5   : > { %v975_v25 = vmul.f32 %v1684_v5, %v974_v18 }
 0x3a6   : > { %v956_v28 = vadd.f32 %v1682_v2, %v955_v43 }
 0x3a7   : > { %v976_v35 = vadd.f32 %v1684_v5, %v975_v25 }
 0x3a8   : > { %v960_v33 = vsel %vm959_vm14, %v1682_v2, %v956_v28 }
 0x3a9   : > { %v965_v34 = vsel %vm962_vm15, %v964_v29, %v960_v33  ;;  %v980_v41 = vsel %vm979_vm2, %v1684_v5, %v976_v35  ;;  %v1009_v5 = vunpack.c.l.bf16 %v1551_v38 }
 0x3aa   : > { %v988_v37 = vmul.f32 %v987_v21, %v965_v34  ;;  %v985_v46 = vsel %vm982_vm3, %v984_v42, %v980_v41  ;;  %v1111_v41 = vunpack.c.h.bf16 %v1554_v39 }
 0x3ab   : > { %v991_v14 = vsub.f32 1.0, %v985_v46  ;;  %v993_v51 = vmul.f32 %v985_v46, %v2176_v0 }
 0x3ac   : > { %v989_v49 = vadd.f32 %v988_v37, %v906_v30  ;;  %v1104_v30 = vpop.permute.xlu2 %1103 }
 0x3ad   : > { %vm1105_vm13 = vcmp.eq.s32.totalorder %v1104_v30, 1 }
 0x3ae   : > { %1685 = vtanh.f32 %v989_v49  ;;  %v1110_v49 = vunpack.c.l.bf16 %v1554_v39 }
 0x3b4   : > { %v1686_v48 = vpop.eup %1685 }
 0x3b5   : > { %v992_v50 = vmul.f32 %v1686_v48, %v991_v14 }
 0x3b7   : > { %v994_v56 = vadd.f32 %v993_v51, %v992_v50 }
 0x3b9   : > { %v2209_v57 = vsel %vm1002_vm4, %v994_v56, %v2176_v0 }
 0x3ba   : > { %v1010_v59 = vpack.c.bf16 %v2209_v57, %v2209_v57 }
 0x3bc   : > { %1019 = vmatmul.bf16.vlgmr.msrb.gmra.mxu3 %v1010_v59  ;;  %1032 = vmatmul.bf16.vlgmr.msra.gmra.mxu0 %v1010_v59 }
 0x3bd   : > { %1045 = vmatmul.bf16.vlgmr.msra.gmra.mxu1 %v1010_v59  ;;  %1243 = vmatpush.bf16.msrb.mxu3 %v1872_v19 }
 0x3c1   : > { %1244 = vmatpush.bf16.msrb.mxu3 %v1887_v27 }
 0x3c5   : > { %1245 = vmatpush.bf16.msrb.mxu3 %v1903_v36 }
 0x3c9   : > { %1246 = vmatpush.bf16.msrb.mxu3 %v1920_v47 }
 0x3cd   : > { %1247 = vmatpush.bf16.msrb.mxu3 %v1947_v58 }
 0x3d1   : > { %1248 = vmatpush.bf16.msrb.mxu3 %v1965_v6 }
 0x3d5   : > { %1249 = vmatpush.bf16.msrb.mxu3 %v1982_v16 }
 0x3d9   : > { %1250 = vmatpush.bf16.msrb.mxu3 %v1993_v24 }
 0x439   : > { %v1033_v62 = vpop.f32.mrf.mxu0 }
 0x43a   : > { %v1070_v0 = vadd.f32 %v1033_v62, %v1008_v61  ;;  %v1046_v53 = vpop.f32.mrf.mxu1 }
 0x43b   : > { %v1090_v2 = vadd.f32 %v2056_v60, %v1046_v53 }
 0x43c   : > { %v1553_v19 = vmul.f32 -1.442695, %v1070_v0 }
 0x43e   : > { %1687 = vpow2.f32 %v1553_v19 }
 0x43f   : > { %v1020_v27 = vpop.f32.mrf.mxu3 }
 0x440   : > { %v1050_v36 = vadd.f32 %v1020_v27, %v1007_v4 }
 0x441   : > { %v1035_v8 = vpop.f32.mrf.mxu0 }
 0x442   : > { %v1552_v47 = vmul.f32 -1.442695, %v1050_v36  ;;  %v1048_v11 = vpop.f32.mrf.mxu1 }
 0x444   : > { %v1688_v58 = vpop.eup %1687  ;;  %1689 = vpow2.f32 %v1552_v47 }
 0x445   : > { %v1074_v6 = vadd.f32 1.0, %v1688_v58  ;;  %v1555_v58 = vld [vmem:[%s1842_s26 + $0x50] sm:$0xf] }
 0x447   : > { %v1022_v12 = vpop.f32.mrf.mxu3  ;;  %1691 = vrcp.f32 %v1074_v6  ;;  %v1086_v18 = vand.u32 2147483648, %v1074_v6  ;;  %vm1080_vm10 = vweird.f32 %v1074_v6  ;;  %v1084_v43 = vand.u32 2147483647, %v1074_v6 }
 0x449   : > { %v1087_v26 = vor.u32 1.1754944e-38, %v1086_v18  ;;  %vm1085_vm12 = vcmp.eq.f32.partialorder %v1084_v43, 8.507059e+37  ;;  %v1558_v43 = vld [vmem:[%s1842_s26 + $0x54] sm:$0xff] }
 0x44a   : > { %v1690_v16 = vpop.eup %1689 }
 0x44b   : > { %v1054_v24 = vadd.f32 1.0, %v1690_v16 }
 0x44d   : > { %1693 = vrcp.f32 %v1054_v24  ;;  %v1692_v20 = vpop.eup %1691  ;;  %v1066_v52 = vand.u32 2147483648, %v1054_v24  ;;  %v1064_v63 = vand.u32 2147483647, %v1054_v24  ;;  %vm1060_vm6 = vweird.f32 %v1054_v24 }
 0x44e   : > { %v1076_v23 = vmul.f32 %v1692_v20, %v1074_v6  ;;  %vm1081_vm9 = vweird.f32 %v1692_v20 }
 0x44f   : > { %v1067_v15 = vor.u32 1.1754944e-38, %v1066_v52  ;;  %vm1065_vm8 = vcmp.eq.f32.partialorder %v1064_v63, 8.507059e+37  ;;  %vm1082_vm11 = vmor %vm1080_vm10, %vm1081_vm9 }
 0x450   : > { %v1077_v40 = vsub.f32 1.0, %v1076_v23  ;;  %v1112_v23 = vunpack.c.l.bf16 %v1555_v58 }
 0x452   : > { %v1078_v1 = vmul.f32 %v1692_v20, %v1077_v40 }
 0x453   : > { %v1694_v31 = vpop.eup %1693 }
 0x454   : > { %v1056_v32 = vmul.f32 %v1694_v31, %v1054_v24  ;;  %vm1061_vm5 = vweird.f32 %v1694_v31  ;;  %v1079_v9 = vadd.f32 %v1692_v20, %v1078_v1  ;;  %v2233_v24 = vld [vmem:[%s1832_s10] ss:$0 sm:$0xff] }
 0x455   : > { %vm1062_vm7 = vmor %vm1060_vm6, %vm1061_vm5 }
 0x456   : > { %v1057_v45 = vsub.f32 1.0, %v1056_v32  ;;  %v1083_v25 = vsel %vm1082_vm11, %v1692_v20, %v1079_v9 }
 0x457   : > { %v1088_v28 = vsel %vm1085_vm12, %v1087_v26, %v1083_v25 }
 0x458   : > { %v1058_v54 = vmul.f32 %v1694_v31, %v1057_v45  ;;  %v1094_v29 = vsub.f32 1.0, %v1088_v28  ;;  %v1096_v21 = vmul.f32 %v1088_v28, %v2209_v57 }
 0x45a   : > { %v1059_v13 = vadd.f32 %v1694_v31, %v1058_v54 }
 0x45c   : > { %v1063_v7 = vsel %vm1062_vm7, %v1694_v31, %v1059_v13 }
 0x45d   : > { %v1068_v17 = vsel %vm1065_vm8, %v1067_v15, %v1063_v7 }
 0x45e   : > { %v1091_v10 = vmul.f32 %v1090_v2, %v1068_v17 }
 0x460   : > { %v1092_v22 = vadd.f32 %v1091_v10, %v1009_v5  ;;  %v1207_v5 = vpop.permute.xlu0 %1206 }
 0x461   : > { %vm1208_vm6 = vcmp.eq.s32.totalorder %v1207_v5, 1 }
 0x462   : > { %1695 = vtanh.f32 %v1092_v22  ;;  %v1213_v22 = vunpack.c.l.bf16 %v1558_v43 }
 0x468   : > { %v1696_v60 = vpop.eup %1695 }
 0x469   : > { %v1095_v33 = vmul.f32 %v1696_v60, %v1094_v29  ;;  %v1214_v29 = vunpack.c.h.bf16 %v1558_v43 }
 0x46b   : > { %v1097_v34 = vadd.f32 %v1096_v21, %v1095_v33 }
 0x46d   : > { %v2226_v35 = vsel %vm1105_vm13, %v1097_v34, %v2209_v57 }
 0x46e   : > { %v1113_v37 = vpack.c.bf16 %v2226_v35, %v2226_v35 }
 0x470   : > { %1122 = vmatmul.bf16.vlgmr.msra.gmra.mxu2 %v1113_v37  ;;  %1135 = vmatmul.bf16.vlgmr.msra.gmra.mxu3 %v1113_v37 }
 0x471   : > { %1148 = vmatmul.bf16.vlgmr.msrb.gmra.mxu0 %v1113_v37 }
 0x4ee   : > { %v1149_v3 = vpop.f32.mrf.mxu0 }
 0x4ef   : > { %v1193_v20 = vadd.f32 %v2233_v24, %v1149_v3 }
 0x4f3   : > { %v1123_v42 = vpop.f32.mrf.mxu2  ;;  %v1136_v46 = vpop.f32.mrf.mxu3 }
 0x4f4   : > { %v1153_v14 = vadd.f32 %v1123_v42, %v1110_v49  ;;  %v1173_v48 = vadd.f32 %v1136_v46, %v1111_v41 }
 0x4f6   : > { %v1556_v44 = vmul.f32 -1.442695, %v1153_v14  ;;  %v1557_v50 = vmul.f32 -1.442695, %v1173_v48  ;;  %v1151_v51 = vpop.f32.mrf.mxu0 }
 0x4f8   : > { %1697 = vpow2.f32 %v1556_v44  ;;  %v1559_v44 = vld [vmem:[%s1842_s26 + $0x5c] sm:$0xf] }
 0x4f9   : > { %1699 = vpow2.f32 %v1557_v50 }
 0x4fb   : > { %v1125_v56 = vpop.f32.mrf.mxu2  ;;  %v1138_v57 = vpop.f32.mrf.mxu3 }
 0x4fe   : > { %v1698_v59 = vpop.eup %1697 }
 0x4ff   : > { %v1700_v55 = vpop.eup %1699  ;;  %v1157_v61 = vadd.f32 1.0, %v1698_v59 }
 0x500   : > { %v1177_v62 = vadd.f32 1.0, %v1700_v55  ;;  %v1215_v55 = vunpack.c.l.bf16 %v1559_v44 }
 0x501   : > { %1701 = vrcp.f32 %v1157_v61  ;;  %v1169_v36 = vand.u32 2147483648, %v1157_v61  ;;  %v1167_v11 = vand.u32 2147483647, %v1157_v61  ;;  %vm1163_vm15 = vweird.f32 %v1157_v61 }
 0x502   : > { %1703 = vrcp.f32 %v1177_v62  ;;  %v1189_v52 = vand.u32 2147483648, %v1177_v62  ;;  %vm1183_vm3 = vweird.f32 %v1177_v62  ;;  %v1187_v54 = vand.u32 2147483647, %v1177_v62 }
 0x503   : > { %v1170_v16 = vor.u32 1.1754944e-38, %v1169_v36  ;;  %vm1168_vm1 = vcmp.eq.f32.partialorder %v1167_v11, 8.507059e+37 }
 0x504   : > { %v1190_v38 = vor.u32 1.1754944e-38, %v1189_v52  ;;  %vm1188_vm5 = vcmp.eq.f32.partialorder %v1187_v54, 8.507059e+37 }
 0x507   : > { %v1702_v0 = vpop.eup %1701 }
 0x508   : > { %v1704_v53 = vpop.eup %1703  ;;  %v1159_v19 = vmul.f32 %v1702_v0, %v1157_v61  ;;  %vm1164_vm14 = vweird.f32 %v1702_v0 }
 0x509   : > { %v1179_v4 = vmul.f32 %v1704_v53, %v1177_v62  ;;  %vm1165_vm0 = vmor %vm1163_vm15, %vm1164_vm14  ;;  %vm1184_vm2 = vweird.f32 %v1704_v53 }
 0x50a   : > { %v1160_v27 = vsub.f32 1.0, %v1159_v19  ;;  %vm1185_vm4 = vmor %vm1183_vm3, %vm1184_vm2 }
 0x50b   : > { %v1180_v8 = vsub.f32 1.0, %v1179_v4 }
 0x50c   : > { %v1161_v47 = vmul.f32 %v1702_v0, %v1160_v27 }
 0x50d   : > { %v1181_v6 = vmul.f32 %v1704_v53, %v1180_v8 }
 0x50e   : > { %v1162_v12 = vadd.f32 %v1702_v0, %v1161_v47 }
 0x50f   : > { %v1182_v40 = vadd.f32 %v1704_v53, %v1181_v6 }
 0x510   : > { %v1166_v31 = vsel %vm1165_vm0, %v1702_v0, %v1162_v12 }
 0x511   : > { %v1171_v32 = vsel %vm1168_vm1, %v1170_v16, %v1166_v31  ;;  %v1186_v1 = vsel %vm1185_vm4, %v1704_v53, %v1182_v40 }
 0x512   : > { %v1194_v45 = vmul.f32 %v1193_v20, %v1171_v32  ;;  %v1191_v13 = vsel %vm1188_vm5, %v1190_v38, %v1186_v1 }
 0x513   : > { %v1197_v15 = vsub.f32 1.0, %v1191_v13  ;;  %v1199_v9 = vmul.f32 %v1191_v13, %v2226_v35 }
 0x514   : > { %v1195_v63 = vadd.f32 %v1194_v45, %v1112_v23  ;;  %v1310_v23 = vpop.permute.xlu1 %1309 }
 0x515   : > { %vm1311_vm15 = vcmp.eq.s32.totalorder %v1310_v23, 1 }
 0x516   : > { %1705 = vtanh.f32 %v1195_v63 }
 0x51c   : > { %v1706_v2 = vpop.eup %1705 }
 0x51d   : > { %v1198_v7 = vmul.f32 %v1706_v2, %v1197_v15 }
 0x51f   : > { %v1200_v17 = vadd.f32 %v1199_v9, %v1198_v7 }
 0x521   : > { %v2238_v18 = vsel %vm1208_vm6, %v1200_v17, %v2226_v35 }
 0x522   : > { %v1216_v10 = vpack.c.bf16 %v2238_v18, %v2238_v18 }
 0x524   : > { %1225 = vmatmul.bf16.vlgmr.msrb.gmra.mxu1 %v1216_v10  ;;  %1238 = vmatmul.bf16.vlgmr.msrb.gmra.mxu2 %v1216_v10 }
 0x525   : > { %1251 = vmatmul.bf16.vlgmr.msrb.gmra.mxu3 %v1216_v10 }
 0x5a1   : > { %v1226_v25 = vpop.f32.mrf.mxu1 }
 0x5a2   : > { %v1256_v26 = vadd.f32 %v1226_v25, %v1213_v22 }
 0x5a4   : > { %v1560_v28 = vmul.f32 -1.442695, %v1256_v26 }
 0x5a6   : > { %1707 = vpow2.f32 %v1560_v28 }
 0x5a7   : > { %v1239_v60 = vpop.f32.mrf.mxu2 }
 0x5a8   : > { %v1276_v30 = vadd.f32 %v1239_v60, %v1214_v29  ;;  %v1252_v33 = vpop.f32.mrf.mxu3 }
 0x5a9   : > { %v1228_v21 = vpop.f32.mrf.mxu1  ;;  %v1296_v53 = vadd.f32 %v2233_v24, %v1252_v33 }
 0x5aa   : > { %v1561_v34 = vmul.f32 -1.442695, %v1276_v30 }
 0x5ac   : > { %v1708_v35 = vpop.eup %1707  ;;  %1709 = vpow2.f32 %v1561_v34 }
 0x5ad   : > { %v1260_v37 = vadd.f32 1.0, %v1708_v35 }
 0x5af   : > { %1711 = vrcp.f32 %v1260_v37  ;;  %v1241_v39 = vpop.f32.mrf.mxu2  ;;  %v1272_v48 = vand.u32 2147483648, %v1260_v37  ;;  %v1270_v51 = vand.u32 2147483647, %v1260_v37  ;;  %vm1266_vm8 = vweird.f32 %v1260_v37 }
 0x5b0   : > { %v1254_v3 = vpop.f32.mrf.mxu3 }
 0x5b1   : > { %v1273_v61 = vor.u32 1.1754944e-38, %v1272_v48  ;;  %vm1271_vm10 = vcmp.eq.f32.partialorder %v1270_v51, 8.507059e+37 }
 0x5b2   : > { %v1710_v49 = vpop.eup %1709 }
 0x5b3   : > { %v1280_v41 = vadd.f32 1.0, %v1710_v49 }
 0x5b5   : > { %v1712_v42 = vpop.eup %1711  ;;  %1713 = vrcp.f32 %v1280_v41  ;;  %v1292_v27 = vand.u32 2147483648, %v1280_v41  ;;  %v1290_v8 = vand.u32 2147483647, %v1280_v41  ;;  %vm1286_vm12 = vweird.f32 %v1280_v41 }
 0x5b6   : > { %v1262_v46 = vmul.f32 %v1712_v42, %v1260_v37  ;;  %vm1267_vm7 = vweird.f32 %v1712_v42 }
 0x5b7   : > { %vm1268_vm9 = vmor %vm1266_vm8, %vm1267_vm7  ;;  %v1293_v58 = vor.u32 1.1754944e-38, %v1292_v27  ;;  %vm1291_vm14 = vcmp.eq.f32.partialorder %v1290_v8, 8.507059e+37 }
 0x5b8   : > { %v1263_v14 = vsub.f32 1.0, %v1262_v46 }
 0x5ba   : > { %v1264_v50 = vmul.f32 %v1712_v42, %v1263_v14 }
 0x5bb   : > { %v1714_v56 = vpop.eup %1713 }
 0x5bc   : > { %v1282_v57 = vmul.f32 %v1714_v56, %v1280_v41  ;;  %v1265_v59 = vadd.f32 %v1712_v42, %v1264_v50  ;;  %vm1287_vm11 = vweird.f32 %v1714_v56 }
 0x5bd   : > { %vm1288_vm13 = vmor %vm1286_vm12, %vm1287_vm11 }
 0x5be   : > { %v1283_v62 = vsub.f32 1.0, %v1282_v57  ;;  %v1269_v0 = vsel %vm1268_vm9, %v1712_v42, %v1265_v59 }
 0x5bf   : > { %v1274_v19 = vsel %vm1271_vm10, %v1273_v61, %v1269_v0 }
 0x5c0   : > { %v1284_v4 = vmul.f32 %v1714_v56, %v1283_v62  ;;  %v1297_v36 = vmul.f32 %v1296_v53, %v1274_v19 }
 0x5c2   : > { %v1285_v47 = vadd.f32 %v1714_v56, %v1284_v4  ;;  %v1298_v11 = vadd.f32 %v1297_v36, %v1215_v55 }
 0x5c4   : > { %v1289_v6 = vsel %vm1288_vm13, %v1714_v56, %v1285_v47  ;;  %1715 = vtanh.f32 %v1298_v11 }
 0x5c5   : > { %v1294_v12 = vsel %vm1291_vm14, %v1293_v58, %v1289_v6 }
 0x5c6   : > { %v1300_v16 = vsub.f32 1.0, %v1294_v12  ;;  %v1302_v31 = vmul.f32 %v1294_v12, %v2238_v18 }
 0x5ca   : > { %v1716_v20 = vpop.eup %1715 }
 0x5cb   : > { %v1301_v24 = vmul.f32 %v1716_v20, %v1300_v16 }
 0x5cd   : > { %v1303_v32 = vadd.f32 %v1302_v31, %v1301_v24 }
 0x5cf   : > { %v1312_v40 = vsel %vm1311_vm15, %v1303_v32, %v2238_v18 }
 0x5d0   : > { %1313 = vst [vmem:[%s1837_s13] sm:$0xff] %v1312_v40 }
 0x5d1 PF: > { %s14_s19 = sadd.s32 1, %s1756_s19   ;;  %s2268_s15 = smov %s1748_s17 }
 0x5d2   : > { %p11_p11 = scmp.ge.s32.totalorder %s14_s19, 6   ;;  %s2269_s16 = smov %s1752_s18 }
 0x5d3   : > { %s2270_s17 = smov %s2273_s20  ;;  %s2271_s18 = smov %s2277_s21 }
 0x5d4   :  { %13 = sbr.rel (!%p11_p11) target bundleno = 3 (0x3), region = 90 }

</bundles_post_ra>
